<compile_context>
chip_gen: v6e
topology: v6e:2x2x1
jax: 0.10.0
libtpu: 0.0.40
codegen_flags: <defaults>
</compile_context>

<pallas_src>
import jax
import jax.numpy as jnp
from jax.experimental import pallas as pl
from jax.experimental.pallas import tpu as pltpu


# ----------------------------- Pallas kernel --------------------------------

def char_rnn_kernel(pre_x_ref,    # (T, B, 4H)  x_t @ wx + b, gathered per token
                    spre_x_ref,   # (T, B, 4SH) x_t @ swx + sb, gathered per token
                    wrec_ref,     # (H+S+SH, 4H+4SH) block-diag recurrent weights
                    sdw_ref,      # (SH, S)  senti_dense weight
                    sdb_ref,      # (1, S)   senti_dense bias
                    fw_ref,       # (H, O)   fused dense@output_layer weight
                    fb_ref,       # (1, O)   fused dense@output_layer bias
                    out_ref):     # (T*B, O) time-major log-probs
    T, B, four_h = pre_x_ref.shape
    H = four_h // 4
    four_sh = spre_x_ref.shape[2]
    SH = four_sh // 4
    S = sdw_ref.shape[1]
    O = fw_ref.shape[1]

    wrec = wrec_ref[...]
    sdw = sdw_ref[...]
    # Hoisted bias broadcast (JAX does not CSE broadcast_in_dim in the unroll).
    sdb_b = jnp.broadcast_to(sdb_ref[...], (B, S))

    def gates_to_hc(gates, c, hid):
        # PyTorch LSTM gate order: i, f, g, o
        i = jax.nn.sigmoid(gates[:, 0 * hid:1 * hid])
        f = jax.nn.sigmoid(gates[:, 1 * hid:2 * hid])
        g = jnp.tanh(gates[:, 2 * hid:3 * hid])
        o = jax.nn.sigmoid(gates[:, 3 * hid:4 * hid])
        c_new = f * c + i * g
        h_new = o * jnp.tanh(c_new)
        return h_new, c_new

    h = jnp.zeros((B, H), jnp.float32)
    c = jnp.zeros((B, H), jnp.float32)
    attn = jnp.zeros((B, S), jnp.float32)
    hs = jnp.zeros((B, SH), jnp.float32)
    cs = jnp.zeros((B, SH), jnp.float32)

    h_steps = []
    # Fully unrolled time loop (T is a static, small trip count).
    for t in range(T):
        # --- single recurrent matmul for BOTH LSTMs (block-diagonal W_rec) ---
        state = jnp.concatenate([h, attn, hs], axis=1)          # (B, H+S+SH)
        rec = jnp.dot(state, wrec, preferred_element_type=jnp.float32)
        gates_main = pre_x_ref[t] + rec[:, :4 * H]               # (B, 4H)
        gates_sent = spre_x_ref[t] + rec[:, 4 * H:]              # (B, 4SH)

        # --- main LSTM cell; its h_t feeds the (post-loop) output head ---
        h, c = gates_to_hc(gates_main, c, H)
        h_steps.append(h)

        # --- sentiment LSTM cell + senti_dense + softmax -> attn for t+1 ---
        hs, cs = gates_to_hc(gates_sent, cs, SH)
        # TODO(synk): if profiling shows this tiny (B,SH)@(SH,S) pop on the
        # serial chain, compute it on the VPU (broadcast-mul + reduce) instead.
        senti = jnp.dot(hs, sdw, preferred_element_type=jnp.float32) + sdb_b
        sm = jnp.max(senti, axis=1, keepdims=True)
        e = jnp.exp(senti - sm)
        attn = e / jnp.sum(e, axis=1, keepdims=True)             # exact divide

    # --- batched output head, off the recurrence entirely ---
    h_all = jnp.concatenate(h_steps, axis=0)                     # (T*B, H)
    logits = (jnp.dot(h_all, fw_ref[...], preferred_element_type=jnp.float32)
              + fb_ref[...])                                     # (T*B, O)
    m = jnp.max(logits, axis=1, keepdims=True)
    lse = jnp.log(jnp.sum(jnp.exp(logits - m), axis=1, keepdims=True)) + m
    out_ref[...] = logits - lse


# ------------------------------ JAX wrapper ----------------------------------

def char_rnn_pallas(x_ids, p):
    B, T = x_ids.shape
    H = p["whh"].shape[0]
    SH = p["swhh"].shape[0]
    S = p["sdw"].shape[1]
    O = p["ow"].shape[1]

    # (1) Token-only input projections hoisted out of the recurrence:
    # per-token gate tables, gathered time-major -> (T, B, 4H) / (T, B, 4SH).
    pre_tab = jnp.dot(p["embedding"], p["wx"]) + p["b"]          # (V, 4H)
    spre_tab = jnp.dot(p["embedding"], p["swx"]) + p["sb"]       # (V, 4SH)
    ids_tm = x_ids.T                                             # (T, B)
    pre_x = pre_tab[ids_tm]                                      # (T, B, 4H)
    spre_x = spre_tab[ids_tm]                                    # (T, B, 4SH)

    # (2) Block-diagonal recurrent weight: concat(h, attn, hs) @ W_rec gives
    # [main LSTM gates (4H) | sentiment LSTM gates (4SH)] in one MXU op.
    w_rec = jnp.zeros((H + S + SH, 4 * H + 4 * SH), jnp.float32)
    w_rec = w_rec.at[:H, :4 * H].set(p["whh"])
    w_rec = w_rec.at[H:H + S, :4 * H].set(p["wa"])
    w_rec = w_rec.at[H + S:, 4 * H:].set(p["swhh"])

    # (3) dense -> output_layer fused (no activation between them in PyTorch).
    fw = jnp.dot(p["dw"], p["ow"])                               # (H, O)
    fb = jnp.dot(p["db"], p["ow"]) + p["ob"]                     # (1, O)

    args = [pre_x, spre_x, w_rec, p["sdw"], p["sdb"], fw, fb]
    in_specs = [pl.BlockSpec(memory_space=pltpu.MemorySpace.VMEM) for _ in args]

    out = pl.pallas_call(
        char_rnn_kernel,
        out_shape=jax.ShapeDtypeStruct((T * B, O), jnp.float32),
        in_specs=in_specs,
        out_specs=pl.BlockSpec(memory_space=pltpu.MemorySpace.VMEM),
    )(*args)

    # (T*B, O) time-major -> (B, T, O).
    return out.reshape(T, B, O).transpose(1, 0, 2)

    # TODO(synk): at production sizes, add a batch grid axis with
    # dimension_semantics=("parallel",) (v7x: 2 TCs), stream pre_x / out from
    # HBM via BlockSpec tiles sized against v7x's 64 MiB VMEM (32 MiB default
    # scoped; set pltpu.CompilerParams(vmem_limit_bytes=...)). Unnecessary at
    # B=2, T=8, H=32 where everything fits in a few KiB of VMEM.


# -------------------------- parameter construction ---------------------------

def init_params(key, V, E, H, S, SH, D, O, pad_idx):
    # Deterministic synthetic init (shapes follow the PyTorch module).
    ks = jax.random.split(key, 12)

    def rnd(k, shape, scale=0.1):
        return jax.random.normal(k, shape, jnp.float32) * scale

    emb = rnd(ks[0], (V, E)).at[pad_idx].set(0.0)   # padding_idx row zeroed
    return dict(
        embedding=emb,
        # main LSTM: W_ih^T split into embedding / attn parts, W_hh^T, b_ih+b_hh
        wx=rnd(ks[1], (E, 4 * H)),
        wa=rnd(ks[2], (S, 4 * H)),
        whh=rnd(ks[3], (H, 4 * H)),
        b=jnp.full((1, 4 * H), 2.0, jnp.float32),        # init_rnn sets biases to 1 (+1)
        # sentiment LSTM (hidden = 8 as in SentiBlock(embedding_size, 8, S))
        swx=rnd(ks[4], (E, 4 * SH)),
        swhh=rnd(ks[5], (SH, 4 * SH)),
        sb=jnp.full((1, 4 * SH), 2.0, jnp.float32),
        # senti_dense: Linear(8, S)
        sdw=rnd(ks[6], (SH, S)),
        sdb=rnd(ks[7], (1, S), 0.05),
        # dense: Linear(H, D)
        dw=rnd(ks[8], (H, D)),
        db=rnd(ks[9], (1, D), 0.05),
        # output_layer: Linear(D, O)
        ow=rnd(ks[10], (D, O)),
        ob=rnd(ks[11], (1, O), 0.05),
    )


# ---------------------------- pure-JAX reference ------------------------------

def reference_forward(x_ids, p):
    emb = p["embedding"][x_ids]                    # (B, T, E)
    B, T, _ = emb.shape
    H = p["whh"].shape[0]; SH = p["swhh"].shape[0]; S = p["sdw"].shape[1]
    h = jnp.zeros((B, H)); c = jnp.zeros((B, H))
    attn = jnp.zeros((B, S))
    hs = jnp.zeros((B, SH)); cs = jnp.zeros((B, SH))

    def cell(pre, h, c, whh, hid):
        gates = pre + h @ whh
        i = jax.nn.sigmoid(gates[:, :hid]); f = jax.nn.sigmoid(gates[:, hid:2 * hid])
        g = jnp.tanh(gates[:, 2 * hid:3 * hid]); o = jax.nn.sigmoid(gates[:, 3 * hid:])
        c2 = f * c + i * g
        return o * jnp.tanh(c2), c2

    outs = []
    for t in range(T):
        x_t = emb[:, t, :]
        pre = x_t @ p["wx"] + attn @ p["wa"] + p["b"]
        h, c = cell(pre, h, c, p["whh"], H)
        d = h @ p["dw"] + p["db"]
        logits = d @ p["ow"] + p["ob"]
        outs.append(jax.nn.log_softmax(logits, axis=1))
        spre = x_t @ p["swx"] + p["sb"]
        hs, cs = cell(spre, hs, cs, p["swhh"], SH)
        senti = hs @ p["sdw"] + p["sdb"]
        attn = jax.nn.softmax(senti, axis=1)
    return jnp.stack(outs, axis=1)                 # (B, T, O)


# ----------------------------------- main ------------------------------------

if __name__ == "__main__":
    # Module hyperparameters (small, consistent with the forward pass)
    V = 16          # input_size (vocab)
    E = 16          # embedding_size
    H = 32          # hidden_size
    O = 16          # output_size
    S = 4           # no_sentiments
    SH = 8          # SentiBlock hidden size (hard-coded 8 in CharRNN.__init__)
    D = 32          # dense_size
    PAD = 0         # padding_idx
    B, T = 2, 8     # batch, seq_len

    key = jax.random.PRNGKey(0)
    kp, kx = jax.random.split(key)
    params = init_params(kp, V, E, H, S, SH, D, O, PAD)
    x = jax.random.randint(kx, (B, T), 0, V, dtype=jnp.int32)

    out = char_rnn_pallas(x, params)
    out = jax.block_until_ready(out)

    ref = reference_forward(x, params)
    assert out.shape == (B, T, O), out.shape
    assert jnp.allclose(out, ref, atol=1e-4, rtol=1e-4), "mismatch vs JAX reference"

    print("KERNEL_OK")
</pallas_src>

<mosaic_0001>
module attributes {stable_mosaic.version = 11 : i64} {
  func.func @char_rnn_kernel(%arg0: memref<8x2x128xf32, #tpu.memory_space<vmem>>, %arg1: memref<8x2x32xf32, #tpu.memory_space<vmem>>, %arg2: memref<44x160xf32, #tpu.memory_space<vmem>>, %arg3: memref<8x4xf32, #tpu.memory_space<vmem>>, %arg4: memref<1x4xf32, #tpu.memory_space<vmem>>, %arg5: memref<32x16xf32, #tpu.memory_space<vmem>>, %arg6: memref<1x16xf32, #tpu.memory_space<vmem>>, %arg7: memref<16x16xf32, #tpu.memory_space<vmem>>) attributes {dimension_semantics = [], scalar_prefetch = 0 : i64, scratch_operands = 0 : i64, tpu.core_type = #tpu.core_type<tc>} {
    %c0 = arith.constant 0 : index
    %c0_0 = arith.constant 0 : index
    %0 = vector.load %arg2[%c0, %c0_0] : memref<44x160xf32, #tpu.memory_space<vmem>>, vector<44x160xf32>
    %c0_1 = arith.constant 0 : index
    %c0_2 = arith.constant 0 : index
    %1 = vector.load %arg3[%c0_1, %c0_2] : memref<8x4xf32, #tpu.memory_space<vmem>>, vector<8x4xf32>
    %c0_3 = arith.constant 0 : index
    %c0_4 = arith.constant 0 : index
    %2 = vector.load %arg4[%c0_3, %c0_4] : memref<1x4xf32, #tpu.memory_space<vmem>>, vector<1x4xf32>
    %3 = vector.shape_cast %2 : vector<1x4xf32> to vector<1x4xf32>
    %4 = vector.broadcast %3 : vector<1x4xf32> to vector<2x4xf32>
    %cst = arith.constant 0.000000e+00 : f32
    %5 = vector.broadcast %cst : f32 to vector<2x32xf32>
    %cst_5 = arith.constant 0.000000e+00 : f32
    %6 = vector.broadcast %cst_5 : f32 to vector<2x32xf32>
    %cst_6 = arith.constant 0.000000e+00 : f32
    %7 = vector.broadcast %cst_6 : f32 to vector<2x4xf32>
    %cst_7 = arith.constant 0.000000e+00 : f32
    %8 = vector.broadcast %cst_7 : f32 to vector<2x8xf32>
    %cst_8 = arith.constant 0.000000e+00 : f32
    %9 = vector.broadcast %cst_8 : f32 to vector<2x8xf32>
    %10 = tpu.concatenate %5, %7, %8 in 1 : vector<2x32xf32>, vector<2x4xf32>, vector<2x8xf32> -> vector<2x44xf32>
    %cst_9 = arith.constant dense<0.000000e+00> : vector<2x160xf32>
    %11 = tpu.matmul %10, %0, %cst_9 {dimension_numbers = #tpu.dot_dimension_numbers<[1], [0], [0], [1], [0, 0, 1, 1], [], []>} : vector<2x44xf32>, vector<44x160xf32>, vector<2x160xf32> -> vector<2x160xf32>
    %c0_10 = arith.constant 0 : index
    %c0_11 = arith.constant 0 : index
    %c0_12 = arith.constant 0 : index
    %12 = vector.load %arg0[%c0_10, %c0_11, %c0_12] : memref<8x2x128xf32, #tpu.memory_space<vmem>>, vector<1x2x128xf32>
    %13 = vector.shape_cast %12 : vector<1x2x128xf32> to vector<2x128xf32>
    %14 = vector.extract_strided_slice %11 {offsets = [0, 0], sizes = [2, 128], strides = [1, 1]} : vector<2x160xf32> to vector<2x128xf32>
    %15 = arith.addf %13, %14 : vector<2x128xf32>
    %c0_13 = arith.constant 0 : index
    %c0_14 = arith.constant 0 : index
    %c0_15 = arith.constant 0 : index
    %16 = vector.load %arg1[%c0_13, %c0_14, %c0_15] : memref<8x2x32xf32, #tpu.memory_space<vmem>>, vector<1x2x32xf32>
    %17 = vector.shape_cast %16 : vector<1x2x32xf32> to vector<2x32xf32>
    %18 = vector.extract_strided_slice %11 {offsets = [0, 128], sizes = [2, 32], strides = [1, 1]} : vector<2x160xf32> to vector<2x32xf32>
    %19 = arith.addf %17, %18 : vector<2x32xf32>
    %20 = vector.extract_strided_slice %15 {offsets = [0, 0], sizes = [2, 32], strides = [1, 1]} : vector<2x128xf32> to vector<2x32xf32>
    %21 = arith.negf %20 : vector<2x32xf32>
    %22 = math.exp %21 : vector<2x32xf32>
    %cst_16 = arith.constant 1.000000e+00 : f32
    %23 = vector.broadcast %cst_16 : f32 to vector<2x32xf32>
    %24 = arith.addf %23, %22 : vector<2x32xf32>
    %25 = arith.divf %23, %24 : vector<2x32xf32>
    %26 = vector.extract_strided_slice %15 {offsets = [0, 32], sizes = [2, 32], strides = [1, 1]} : vector<2x128xf32> to vector<2x32xf32>
    %27 = arith.negf %26 : vector<2x32xf32>
    %28 = math.exp %27 : vector<2x32xf32>
    %cst_17 = arith.constant 1.000000e+00 : f32
    %29 = vector.broadcast %cst_17 : f32 to vector<2x32xf32>
    %30 = arith.addf %29, %28 : vector<2x32xf32>
    %31 = arith.divf %29, %30 : vector<2x32xf32>
    %32 = vector.extract_strided_slice %15 {offsets = [0, 64], sizes = [2, 32], strides = [1, 1]} : vector<2x128xf32> to vector<2x32xf32>
    %33 = math.tanh %32 : vector<2x32xf32>
    %34 = vector.extract_strided_slice %15 {offsets = [0, 96], sizes = [2, 32], strides = [1, 1]} : vector<2x128xf32> to vector<2x32xf32>
    %35 = arith.negf %34 : vector<2x32xf32>
    %36 = math.exp %35 : vector<2x32xf32>
    %cst_18 = arith.constant 1.000000e+00 : f32
    %37 = vector.broadcast %cst_18 : f32 to vector<2x32xf32>
    %38 = arith.addf %37, %36 : vector<2x32xf32>
    %39 = arith.divf %37, %38 : vector<2x32xf32>
    %40 = arith.mulf %31, %6 : vector<2x32xf32>
    %41 = arith.mulf %25, %33 : vector<2x32xf32>
    %42 = arith.addf %40, %41 : vector<2x32xf32>
    %43 = math.tanh %42 : vector<2x32xf32>
    %44 = arith.mulf %39, %43 : vector<2x32xf32>
    %45 = vector.extract_strided_slice %19 {offsets = [0, 0], sizes = [2, 8], strides = [1, 1]} : vector<2x32xf32> to vector<2x8xf32>
    %46 = arith.negf %45 : vector<2x8xf32>
    %47 = math.exp %46 : vector<2x8xf32>
    %cst_19 = arith.constant 1.000000e+00 : f32
    %48 = vector.broadcast %cst_19 : f32 to vector<2x8xf32>
    %49 = arith.addf %48, %47 : vector<2x8xf32>
    %50 = arith.divf %48, %49 : vector<2x8xf32>
    %51 = vector.extract_strided_slice %19 {offsets = [0, 8], sizes = [2, 8], strides = [1, 1]} : vector<2x32xf32> to vector<2x8xf32>
    %52 = arith.negf %51 : vector<2x8xf32>
    %53 = math.exp %52 : vector<2x8xf32>
    %cst_20 = arith.constant 1.000000e+00 : f32
    %54 = vector.broadcast %cst_20 : f32 to vector<2x8xf32>
    %55 = arith.addf %54, %53 : vector<2x8xf32>
    %56 = arith.divf %54, %55 : vector<2x8xf32>
    %57 = vector.extract_strided_slice %19 {offsets = [0, 16], sizes = [2, 8], strides = [1, 1]} : vector<2x32xf32> to vector<2x8xf32>
    %58 = math.tanh %57 : vector<2x8xf32>
    %59 = vector.extract_strided_slice %19 {offsets = [0, 24], sizes = [2, 8], strides = [1, 1]} : vector<2x32xf32> to vector<2x8xf32>
    %60 = arith.negf %59 : vector<2x8xf32>
    %61 = math.exp %60 : vector<2x8xf32>
    %cst_21 = arith.constant 1.000000e+00 : f32
    %62 = vector.broadcast %cst_21 : f32 to vector<2x8xf32>
    %63 = arith.addf %62, %61 : vector<2x8xf32>
    %64 = arith.divf %62, %63 : vector<2x8xf32>
    %65 = arith.mulf %56, %9 : vector<2x8xf32>
    %66 = arith.mulf %50, %58 : vector<2x8xf32>
    %67 = arith.addf %65, %66 : vector<2x8xf32>
    %68 = math.tanh %67 : vector<2x8xf32>
    %69 = arith.mulf %64, %68 : vector<2x8xf32>
    %cst_22 = arith.constant dense<0.000000e+00> : vector<2x4xf32>
    %70 = tpu.matmul %69, %1, %cst_22 {dimension_numbers = #tpu.dot_dimension_numbers<[1], [0], [0], [1], [0, 0, 1, 1], [], []>} : vector<2x8xf32>, vector<8x4xf32>, vector<2x4xf32> -> vector<2x4xf32>
    %71 = arith.addf %70, %4 : vector<2x4xf32>
    %cst_23 = arith.constant dense<0xFF800000> : vector<2xf32>
    %72 = vector.multi_reduction <maximumf>, %71, %cst_23 [1] : vector<2x4xf32> to vector<2xf32>
    %73 = vector.shape_cast %72 : vector<2xf32> to vector<2x1xf32>
    %74 = vector.broadcast %73 : vector<2x1xf32> to vector<2x4xf32>
    %75 = arith.subf %71, %74 : vector<2x4xf32>
    %76 = math.exp %75 : vector<2x4xf32>
    %cst_24 = arith.constant dense<0.000000e+00> : vector<2xf32>
    %77 = vector.multi_reduction <add>, %76, %cst_24 [1] : vector<2x4xf32> to vector<2xf32>
    %78 = vector.shape_cast %77 : vector<2xf32> to vector<2x1xf32>
    %79 = vector.broadcast %78 : vector<2x1xf32> to vector<2x4xf32>
    %80 = arith.divf %76, %79 : vector<2x4xf32>
    %81 = tpu.concatenate %44, %80, %69 in 1 : vector<2x32xf32>, vector<2x4xf32>, vector<2x8xf32> -> vector<2x44xf32>
    %cst_25 = arith.constant dense<0.000000e+00> : vector<2x160xf32>
    %82 = tpu.matmul %81, %0, %cst_25 {dimension_numbers = #tpu.dot_dimension_numbers<[1], [0], [0], [1], [0, 0, 1, 1], [], []>} : vector<2x44xf32>, vector<44x160xf32>, vector<2x160xf32> -> vector<2x160xf32>
    %c1 = arith.constant 1 : index
    %c0_26 = arith.constant 0 : index
    %c0_27 = arith.constant 0 : index
    %83 = vector.load %arg0[%c1, %c0_26, %c0_27] : memref<8x2x128xf32, #tpu.memory_space<vmem>>, vector<1x2x128xf32>
    %84 = vector.shape_cast %83 : vector<1x2x128xf32> to vector<2x128xf32>
    %85 = vector.extract_strided_slice %82 {offsets = [0, 0], sizes = [2, 128], strides = [1, 1]} : vector<2x160xf32> to vector<2x128xf32>
    %86 = arith.addf %84, %85 : vector<2x128xf32>
    %c1_28 = arith.constant 1 : index
    %c0_29 = arith.constant 0 : index
    %c0_30 = arith.constant 0 : index
    %87 = vector.load %arg1[%c1_28, %c0_29, %c0_30] : memref<8x2x32xf32, #tpu.memory_space<vmem>>, vector<1x2x32xf32>
    %88 = vector.shape_cast %87 : vector<1x2x32xf32> to vector<2x32xf32>
    %89 = vector.extract_strided_slice %82 {offsets = [0, 128], sizes = [2, 32], strides = [1, 1]} : vector<2x160xf32> to vector<2x32xf32>
    %90 = arith.addf %88, %89 : vector<2x32xf32>
    %91 = vector.extract_strided_slice %86 {offsets = [0, 0], sizes = [2, 32], strides = [1, 1]} : vector<2x128xf32> to vector<2x32xf32>
    %92 = arith.negf %91 : vector<2x32xf32>
    %93 = math.exp %92 : vector<2x32xf32>
    %cst_31 = arith.constant 1.000000e+00 : f32
    %94 = vector.broadcast %cst_31 : f32 to vector<2x32xf32>
    %95 = arith.addf %94, %93 : vector<2x32xf32>
    %96 = arith.divf %94, %95 : vector<2x32xf32>
    %97 = vector.extract_strided_slice %86 {offsets = [0, 32], sizes = [2, 32], strides = [1, 1]} : vector<2x128xf32> to vector<2x32xf32>
    %98 = arith.negf %97 : vector<2x32xf32>
    %99 = math.exp %98 : vector<2x32xf32>
    %cst_32 = arith.constant 1.000000e+00 : f32
    %100 = vector.broadcast %cst_32 : f32 to vector<2x32xf32>
    %101 = arith.addf %100, %99 : vector<2x32xf32>
    %102 = arith.divf %100, %101 : vector<2x32xf32>
    %103 = vector.extract_strided_slice %86 {offsets = [0, 64], sizes = [2, 32], strides = [1, 1]} : vector<2x128xf32> to vector<2x32xf32>
    %104 = math.tanh %103 : vector<2x32xf32>
    %105 = vector.extract_strided_slice %86 {offsets = [0, 96], sizes = [2, 32], strides = [1, 1]} : vector<2x128xf32> to vector<2x32xf32>
    %106 = arith.negf %105 : vector<2x32xf32>
    %107 = math.exp %106 : vector<2x32xf32>
    %cst_33 = arith.constant 1.000000e+00 : f32
    %108 = vector.broadcast %cst_33 : f32 to vector<2x32xf32>
    %109 = arith.addf %108, %107 : vector<2x32xf32>
    %110 = arith.divf %108, %109 : vector<2x32xf32>
    %111 = arith.mulf %102, %42 : vector<2x32xf32>
    %112 = arith.mulf %96, %104 : vector<2x32xf32>
    %113 = arith.addf %111, %112 : vector<2x32xf32>
    %114 = math.tanh %113 : vector<2x32xf32>
    %115 = arith.mulf %110, %114 : vector<2x32xf32>
    %116 = vector.extract_strided_slice %90 {offsets = [0, 0], sizes = [2, 8], strides = [1, 1]} : vector<2x32xf32> to vector<2x8xf32>
    %117 = arith.negf %116 : vector<2x8xf32>
    %118 = math.exp %117 : vector<2x8xf32>
    %cst_34 = arith.constant 1.000000e+00 : f32
    %119 = vector.broadcast %cst_34 : f32 to vector<2x8xf32>
    %120 = arith.addf %119, %118 : vector<2x8xf32>
    %121 = arith.divf %119, %120 : vector<2x8xf32>
    %122 = vector.extract_strided_slice %90 {offsets = [0, 8], sizes = [2, 8], strides = [1, 1]} : vector<2x32xf32> to vector<2x8xf32>
    %123 = arith.negf %122 : vector<2x8xf32>
    %124 = math.exp %123 : vector<2x8xf32>
    %cst_35 = arith.constant 1.000000e+00 : f32
    %125 = vector.broadcast %cst_35 : f32 to vector<2x8xf32>
    %126 = arith.addf %125, %124 : vector<2x8xf32>
    %127 = arith.divf %125, %126 : vector<2x8xf32>
    %128 = vector.extract_strided_slice %90 {offsets = [0, 16], sizes = [2, 8], strides = [1, 1]} : vector<2x32xf32> to vector<2x8xf32>
    %129 = math.tanh %128 : vector<2x8xf32>
    %130 = vector.extract_strided_slice %90 {offsets = [0, 24], sizes = [2, 8], strides = [1, 1]} : vector<2x32xf32> to vector<2x8xf32>
    %131 = arith.negf %130 : vector<2x8xf32>
    %132 = math.exp %131 : vector<2x8xf32>
    %cst_36 = arith.constant 1.000000e+00 : f32
    %133 = vector.broadcast %cst_36 : f32 to vector<2x8xf32>
    %134 = arith.addf %133, %132 : vector<2x8xf32>
    %135 = arith.divf %133, %134 : vector<2x8xf32>
    %136 = arith.mulf %127, %67 : vector<2x8xf32>
    %137 = arith.mulf %121, %129 : vector<2x8xf32>
    %138 = arith.addf %136, %137 : vector<2x8xf32>
    %139 = math.tanh %138 : vector<2x8xf32>
    %140 = arith.mulf %135, %139 : vector<2x8xf32>
    %cst_37 = arith.constant dense<0.000000e+00> : vector<2x4xf32>
    %141 = tpu.matmul %140, %1, %cst_37 {dimension_numbers = #tpu.dot_dimension_numbers<[1], [0], [0], [1], [0, 0, 1, 1], [], []>} : vector<2x8xf32>, vector<8x4xf32>, vector<2x4xf32> -> vector<2x4xf32>
    %142 = arith.addf %141, %4 : vector<2x4xf32>
    %cst_38 = arith.constant dense<0xFF800000> : vector<2xf32>
    %143 = vector.multi_reduction <maximumf>, %142, %cst_38 [1] : vector<2x4xf32> to vector<2xf32>
    %144 = vector.shape_cast %143 : vector<2xf32> to vector<2x1xf32>
    %145 = vector.broadcast %144 : vector<2x1xf32> to vector<2x4xf32>
    %146 = arith.subf %142, %145 : vector<2x4xf32>
    %147 = math.exp %146 : vector<2x4xf32>
    %cst_39 = arith.constant dense<0.000000e+00> : vector<2xf32>
    %148 = vector.multi_reduction <add>, %147, %cst_39 [1] : vector<2x4xf32> to vector<2xf32>
    %149 = vector.shape_cast %148 : vector<2xf32> to vector<2x1xf32>
    %150 = vector.broadcast %149 : vector<2x1xf32> to vector<2x4xf32>
    %151 = arith.divf %147, %150 : vector<2x4xf32>
    %152 = tpu.concatenate %115, %151, %140 in 1 : vector<2x32xf32>, vector<2x4xf32>, vector<2x8xf32> -> vector<2x44xf32>
    %cst_40 = arith.constant dense<0.000000e+00> : vector<2x160xf32>
    %153 = tpu.matmul %152, %0, %cst_40 {dimension_numbers = #tpu.dot_dimension_numbers<[1], [0], [0], [1], [0, 0, 1, 1], [], []>} : vector<2x44xf32>, vector<44x160xf32>, vector<2x160xf32> -> vector<2x160xf32>
    %c2 = arith.constant 2 : index
    %c0_41 = arith.constant 0 : index
    %c0_42 = arith.constant 0 : index
    %154 = vector.load %arg0[%c2, %c0_41, %c0_42] : memref<8x2x128xf32, #tpu.memory_space<vmem>>, vector<1x2x128xf32>
    %155 = vector.shape_cast %154 : vector<1x2x128xf32> to vector<2x128xf32>
    %156 = vector.extract_strided_slice %153 {offsets = [0, 0], sizes = [2, 128], strides = [1, 1]} : vector<2x160xf32> to vector<2x128xf32>
    %157 = arith.addf %155, %156 : vector<2x128xf32>
    %c2_43 = arith.constant 2 : index
    %c0_44 = arith.constant 0 : index
    %c0_45 = arith.constant 0 : index
    %158 = vector.load %arg1[%c2_43, %c0_44, %c0_45] : memref<8x2x32xf32, #tpu.memory_space<vmem>>, vector<1x2x32xf32>
    %159 = vector.shape_cast %158 : vector<1x2x32xf32> to vector<2x32xf32>
    %160 = vector.extract_strided_slice %153 {offsets = [0, 128], sizes = [2, 32], strides = [1, 1]} : vector<2x160xf32> to vector<2x32xf32>
    %161 = arith.addf %159, %160 : vector<2x32xf32>
    %162 = vector.extract_strided_slice %157 {offsets = [0, 0], sizes = [2, 32], strides = [1, 1]} : vector<2x128xf32> to vector<2x32xf32>
    %163 = arith.negf %162 : vector<2x32xf32>
    %164 = math.exp %163 : vector<2x32xf32>
    %cst_46 = arith.constant 1.000000e+00 : f32
    %165 = vector.broadcast %cst_46 : f32 to vector<2x32xf32>
    %166 = arith.addf %165, %164 : vector<2x32xf32>
    %167 = arith.divf %165, %166 : vector<2x32xf32>
    %168 = vector.extract_strided_slice %157 {offsets = [0, 32], sizes = [2, 32], strides = [1, 1]} : vector<2x128xf32> to vector<2x32xf32>
    %169 = arith.negf %168 : vector<2x32xf32>
    %170 = math.exp %169 : vector<2x32xf32>
    %cst_47 = arith.constant 1.000000e+00 : f32
    %171 = vector.broadcast %cst_47 : f32 to vector<2x32xf32>
    %172 = arith.addf %171, %170 : vector<2x32xf32>
    %173 = arith.divf %171, %172 : vector<2x32xf32>
    %174 = vector.extract_strided_slice %157 {offsets = [0, 64], sizes = [2, 32], strides = [1, 1]} : vector<2x128xf32> to vector<2x32xf32>
    %175 = math.tanh %174 : vector<2x32xf32>
    %176 = vector.extract_strided_slice %157 {offsets = [0, 96], sizes = [2, 32], strides = [1, 1]} : vector<2x128xf32> to vector<2x32xf32>
    %177 = arith.negf %176 : vector<2x32xf32>
    %178 = math.exp %177 : vector<2x32xf32>
    %cst_48 = arith.constant 1.000000e+00 : f32
    %179 = vector.broadcast %cst_48 : f32 to vector<2x32xf32>
    %180 = arith.addf %179, %178 : vector<2x32xf32>
    %181 = arith.divf %179, %180 : vector<2x32xf32>
    %182 = arith.mulf %173, %113 : vector<2x32xf32>
    %183 = arith.mulf %167, %175 : vector<2x32xf32>
    %184 = arith.addf %182, %183 : vector<2x32xf32>
    %185 = math.tanh %184 : vector<2x32xf32>
    %186 = arith.mulf %181, %185 : vector<2x32xf32>
    %187 = vector.extract_strided_slice %161 {offsets = [0, 0], sizes = [2, 8], strides = [1, 1]} : vector<2x32xf32> to vector<2x8xf32>
    %188 = arith.negf %187 : vector<2x8xf32>
    %189 = math.exp %188 : vector<2x8xf32>
    %cst_49 = arith.constant 1.000000e+00 : f32
    %190 = vector.broadcast %cst_49 : f32 to vector<2x8xf32>
    %191 = arith.addf %190, %189 : vector<2x8xf32>
    %192 = arith.divf %190, %191 : vector<2x8xf32>
    %193 = vector.extract_strided_slice %161 {offsets = [0, 8], sizes = [2, 8], strides = [1, 1]} : vector<2x32xf32> to vector<2x8xf32>
    %194 = arith.negf %193 : vector<2x8xf32>
    %195 = math.exp %194 : vector<2x8xf32>
    %cst_50 = arith.constant 1.000000e+00 : f32
    %196 = vector.broadcast %cst_50 : f32 to vector<2x8xf32>
    %197 = arith.addf %196, %195 : vector<2x8xf32>
    %198 = arith.divf %196, %197 : vector<2x8xf32>
    %199 = vector.extract_strided_slice %161 {offsets = [0, 16], sizes = [2, 8], strides = [1, 1]} : vector<2x32xf32> to vector<2x8xf32>
    %200 = math.tanh %199 : vector<2x8xf32>
    %201 = vector.extract_strided_slice %161 {offsets = [0, 24], sizes = [2, 8], strides = [1, 1]} : vector<2x32xf32> to vector<2x8xf32>
    %202 = arith.negf %201 : vector<2x8xf32>
    %203 = math.exp %202 : vector<2x8xf32>
    %cst_51 = arith.constant 1.000000e+00 : f32
    %204 = vector.broadcast %cst_51 : f32 to vector<2x8xf32>
    %205 = arith.addf %204, %203 : vector<2x8xf32>
    %206 = arith.divf %204, %205 : vector<2x8xf32>
    %207 = arith.mulf %198, %138 : vector<2x8xf32>
    %208 = arith.mulf %192, %200 : vector<2x8xf32>
    %209 = arith.addf %207, %208 : vector<2x8xf32>
    %210 = math.tanh %209 : vector<2x8xf32>
    %211 = arith.mulf %206, %210 : vector<2x8xf32>
    %cst_52 = arith.constant dense<0.000000e+00> : vector<2x4xf32>
    %212 = tpu.matmul %211, %1, %cst_52 {dimension_numbers = #tpu.dot_dimension_numbers<[1], [0], [0], [1], [0, 0, 1, 1], [], []>} : vector<2x8xf32>, vector<8x4xf32>, vector<2x4xf32> -> vector<2x4xf32>
    %213 = arith.addf %212, %4 : vector<2x4xf32>
    %cst_53 = arith.constant dense<0xFF800000> : vector<2xf32>
    %214 = vector.multi_reduction <maximumf>, %213, %cst_53 [1] : vector<2x4xf32> to vector<2xf32>
    %215 = vector.shape_cast %214 : vector<2xf32> to vector<2x1xf32>
    %216 = vector.broadcast %215 : vector<2x1xf32> to vector<2x4xf32>
    %217 = arith.subf %213, %216 : vector<2x4xf32>
    %218 = math.exp %217 : vector<2x4xf32>
    %cst_54 = arith.constant dense<0.000000e+00> : vector<2xf32>
    %219 = vector.multi_reduction <add>, %218, %cst_54 [1] : vector<2x4xf32> to vector<2xf32>
    %220 = vector.shape_cast %219 : vector<2xf32> to vector<2x1xf32>
    %221 = vector.broadcast %220 : vector<2x1xf32> to vector<2x4xf32>
    %222 = arith.divf %218, %221 : vector<2x4xf32>
    %223 = tpu.concatenate %186, %222, %211 in 1 : vector<2x32xf32>, vector<2x4xf32>, vector<2x8xf32> -> vector<2x44xf32>
    %cst_55 = arith.constant dense<0.000000e+00> : vector<2x160xf32>
    %224 = tpu.matmul %223, %0, %cst_55 {dimension_numbers = #tpu.dot_dimension_numbers<[1], [0], [0], [1], [0, 0, 1, 1], [], []>} : vector<2x44xf32>, vector<44x160xf32>, vector<2x160xf32> -> vector<2x160xf32>
    %c3 = arith.constant 3 : index
    %c0_56 = arith.constant 0 : index
    %c0_57 = arith.constant 0 : index
    %225 = vector.load %arg0[%c3, %c0_56, %c0_57] : memref<8x2x128xf32, #tpu.memory_space<vmem>>, vector<1x2x128xf32>
    %226 = vector.shape_cast %225 : vector<1x2x128xf32> to vector<2x128xf32>
    %227 = vector.extract_strided_slice %224 {offsets = [0, 0], sizes = [2, 128], strides = [1, 1]} : vector<2x160xf32> to vector<2x128xf32>
    %228 = arith.addf %226, %227 : vector<2x128xf32>
    %c3_58 = arith.constant 3 : index
    %c0_59 = arith.constant 0 : index
    %c0_60 = arith.constant 0 : index
    %229 = vector.load %arg1[%c3_58, %c0_59, %c0_60] : memref<8x2x32xf32, #tpu.memory_space<vmem>>, vector<1x2x32xf32>
    %230 = vector.shape_cast %229 : vector<1x2x32xf32> to vector<2x32xf32>
    %231 = vector.extract_strided_slice %224 {offsets = [0, 128], sizes = [2, 32], strides = [1, 1]} : vector<2x160xf32> to vector<2x32xf32>
    %232 = arith.addf %230, %231 : vector<2x32xf32>
    %233 = vector.extract_strided_slice %228 {offsets = [0, 0], sizes = [2, 32], strides = [1, 1]} : vector<2x128xf32> to vector<2x32xf32>
    %234 = arith.negf %233 : vector<2x32xf32>
    %235 = math.exp %234 : vector<2x32xf32>
    %cst_61 = arith.constant 1.000000e+00 : f32
    %236 = vector.broadcast %cst_61 : f32 to vector<2x32xf32>
    %237 = arith.addf %236, %235 : vector<2x32xf32>
    %238 = arith.divf %236, %237 : vector<2x32xf32>
    %239 = vector.extract_strided_slice %228 {offsets = [0, 32], sizes = [2, 32], strides = [1, 1]} : vector<2x128xf32> to vector<2x32xf32>
    %240 = arith.negf %239 : vector<2x32xf32>
    %241 = math.exp %240 : vector<2x32xf32>
    %cst_62 = arith.constant 1.000000e+00 : f32
    %242 = vector.broadcast %cst_62 : f32 to vector<2x32xf32>
    %243 = arith.addf %242, %241 : vector<2x32xf32>
    %244 = arith.divf %242, %243 : vector<2x32xf32>
    %245 = vector.extract_strided_slice %228 {offsets = [0, 64], sizes = [2, 32], strides = [1, 1]} : vector<2x128xf32> to vector<2x32xf32>
    %246 = math.tanh %245 : vector<2x32xf32>
    %247 = vector.extract_strided_slice %228 {offsets = [0, 96], sizes = [2, 32], strides = [1, 1]} : vector<2x128xf32> to vector<2x32xf32>
    %248 = arith.negf %247 : vector<2x32xf32>
    %249 = math.exp %248 : vector<2x32xf32>
    %cst_63 = arith.constant 1.000000e+00 : f32
    %250 = vector.broadcast %cst_63 : f32 to vector<2x32xf32>
    %251 = arith.addf %250, %249 : vector<2x32xf32>
    %252 = arith.divf %250, %251 : vector<2x32xf32>
    %253 = arith.mulf %244, %184 : vector<2x32xf32>
    %254 = arith.mulf %238, %246 : vector<2x32xf32>
    %255 = arith.addf %253, %254 : vector<2x32xf32>
    %256 = math.tanh %255 : vector<2x32xf32>
    %257 = arith.mulf %252, %256 : vector<2x32xf32>
    %258 = vector.extract_strided_slice %232 {offsets = [0, 0], sizes = [2, 8], strides = [1, 1]} : vector<2x32xf32> to vector<2x8xf32>
    %259 = arith.negf %258 : vector<2x8xf32>
    %260 = math.exp %259 : vector<2x8xf32>
    %cst_64 = arith.constant 1.000000e+00 : f32
    %261 = vector.broadcast %cst_64 : f32 to vector<2x8xf32>
    %262 = arith.addf %261, %260 : vector<2x8xf32>
    %263 = arith.divf %261, %262 : vector<2x8xf32>
    %264 = vector.extract_strided_slice %232 {offsets = [0, 8], sizes = [2, 8], strides = [1, 1]} : vector<2x32xf32> to vector<2x8xf32>
    %265 = arith.negf %264 : vector<2x8xf32>
    %266 = math.exp %265 : vector<2x8xf32>
    %cst_65 = arith.constant 1.000000e+00 : f32
    %267 = vector.broadcast %cst_65 : f32 to vector<2x8xf32>
    %268 = arith.addf %267, %266 : vector<2x8xf32>
    %269 = arith.divf %267, %268 : vector<2x8xf32>
    %270 = vector.extract_strided_slice %232 {offsets = [0, 16], sizes = [2, 8], strides = [1, 1]} : vector<2x32xf32> to vector<2x8xf32>
    %271 = math.tanh %270 : vector<2x8xf32>
    %272 = vector.extract_strided_slice %232 {offsets = [0, 24], sizes = [2, 8], strides = [1, 1]} : vector<2x32xf32> to vector<2x8xf32>
    %273 = arith.negf %272 : vector<2x8xf32>
    %274 = math.exp %273 : vector<2x8xf32>
    %cst_66 = arith.constant 1.000000e+00 : f32
    %275 = vector.broadcast %cst_66 : f32 to vector<2x8xf32>
    %276 = arith.addf %275, %274 : vector<2x8xf32>
    %277 = arith.divf %275, %276 : vector<2x8xf32>
    %278 = arith.mulf %269, %209 : vector<2x8xf32>
    %279 = arith.mulf %263, %271 : vector<2x8xf32>
    %280 = arith.addf %278, %279 : vector<2x8xf32>
    %281 = math.tanh %280 : vector<2x8xf32>
    %282 = arith.mulf %277, %281 : vector<2x8xf32>
    %cst_67 = arith.constant dense<0.000000e+00> : vector<2x4xf32>
    %283 = tpu.matmul %282, %1, %cst_67 {dimension_numbers = #tpu.dot_dimension_numbers<[1], [0], [0], [1], [0, 0, 1, 1], [], []>} : vector<2x8xf32>, vector<8x4xf32>, vector<2x4xf32> -> vector<2x4xf32>
    %284 = arith.addf %283, %4 : vector<2x4xf32>
    %cst_68 = arith.constant dense<0xFF800000> : vector<2xf32>
    %285 = vector.multi_reduction <maximumf>, %284, %cst_68 [1] : vector<2x4xf32> to vector<2xf32>
    %286 = vector.shape_cast %285 : vector<2xf32> to vector<2x1xf32>
    %287 = vector.broadcast %286 : vector<2x1xf32> to vector<2x4xf32>
    %288 = arith.subf %284, %287 : vector<2x4xf32>
    %289 = math.exp %288 : vector<2x4xf32>
    %cst_69 = arith.constant dense<0.000000e+00> : vector<2xf32>
    %290 = vector.multi_reduction <add>, %289, %cst_69 [1] : vector<2x4xf32> to vector<2xf32>
    %291 = vector.shape_cast %290 : vector<2xf32> to vector<2x1xf32>
    %292 = vector.broadcast %291 : vector<2x1xf32> to vector<2x4xf32>
    %293 = arith.divf %289, %292 : vector<2x4xf32>
    %294 = tpu.concatenate %257, %293, %282 in 1 : vector<2x32xf32>, vector<2x4xf32>, vector<2x8xf32> -> vector<2x44xf32>
    %cst_70 = arith.constant dense<0.000000e+00> : vector<2x160xf32>
    %295 = tpu.matmul %294, %0, %cst_70 {dimension_numbers = #tpu.dot_dimension_numbers<[1], [0], [0], [1], [0, 0, 1, 1], [], []>} : vector<2x44xf32>, vector<44x160xf32>, vector<2x160xf32> -> vector<2x160xf32>
    %c4 = arith.constant 4 : index
    %c0_71 = arith.constant 0 : index
    %c0_72 = arith.constant 0 : index
    %296 = vector.load %arg0[%c4, %c0_71, %c0_72] : memref<8x2x128xf32, #tpu.memory_space<vmem>>, vector<1x2x128xf32>
    %297 = vector.shape_cast %296 : vector<1x2x128xf32> to vector<2x128xf32>
    %298 = vector.extract_strided_slice %295 {offsets = [0, 0], sizes = [2, 128], strides = [1, 1]} : vector<2x160xf32> to vector<2x128xf32>
    %299 = arith.addf %297, %298 : vector<2x128xf32>
    %c4_73 = arith.constant 4 : index
    %c0_74 = arith.constant 0 : index
    %c0_75 = arith.constant 0 : index
    %300 = vector.load %arg1[%c4_73, %c0_74, %c0_75] : memref<8x2x32xf32, #tpu.memory_space<vmem>>, vector<1x2x32xf32>
    %301 = vector.shape_cast %300 : vector<1x2x32xf32> to vector<2x32xf32>
    %302 = vector.extract_strided_slice %295 {offsets = [0, 128], sizes = [2, 32], strides = [1, 1]} : vector<2x160xf32> to vector<2x32xf32>
    %303 = arith.addf %301, %302 : vector<2x32xf32>
    %304 = vector.extract_strided_slice %299 {offsets = [0, 0], sizes = [2, 32], strides = [1, 1]} : vector<2x128xf32> to vector<2x32xf32>
    %305 = arith.negf %304 : vector<2x32xf32>
    %306 = math.exp %305 : vector<2x32xf32>
    %cst_76 = arith.constant 1.000000e+00 : f32
    %307 = vector.broadcast %cst_76 : f32 to vector<2x32xf32>
    %308 = arith.addf %307, %306 : vector<2x32xf32>
    %309 = arith.divf %307, %308 : vector<2x32xf32>
    %310 = vector.extract_strided_slice %299 {offsets = [0, 32], sizes = [2, 32], strides = [1, 1]} : vector<2x128xf32> to vector<2x32xf32>
    %311 = arith.negf %310 : vector<2x32xf32>
    %312 = math.exp %311 : vector<2x32xf32>
    %cst_77 = arith.constant 1.000000e+00 : f32
    %313 = vector.broadcast %cst_77 : f32 to vector<2x32xf32>
    %314 = arith.addf %313, %312 : vector<2x32xf32>
    %315 = arith.divf %313, %314 : vector<2x32xf32>
    %316 = vector.extract_strided_slice %299 {offsets = [0, 64], sizes = [2, 32], strides = [1, 1]} : vector<2x128xf32> to vector<2x32xf32>
    %317 = math.tanh %316 : vector<2x32xf32>
    %318 = vector.extract_strided_slice %299 {offsets = [0, 96], sizes = [2, 32], strides = [1, 1]} : vector<2x128xf32> to vector<2x32xf32>
    %319 = arith.negf %318 : vector<2x32xf32>
    %320 = math.exp %319 : vector<2x32xf32>
    %cst_78 = arith.constant 1.000000e+00 : f32
    %321 = vector.broadcast %cst_78 : f32 to vector<2x32xf32>
    %322 = arith.addf %321, %320 : vector<2x32xf32>
    %323 = arith.divf %321, %322 : vector<2x32xf32>
    %324 = arith.mulf %315, %255 : vector<2x32xf32>
    %325 = arith.mulf %309, %317 : vector<2x32xf32>
    %326 = arith.addf %324, %325 : vector<2x32xf32>
    %327 = math.tanh %326 : vector<2x32xf32>
    %328 = arith.mulf %323, %327 : vector<2x32xf32>
    %329 = vector.extract_strided_slice %303 {offsets = [0, 0], sizes = [2, 8], strides = [1, 1]} : vector<2x32xf32> to vector<2x8xf32>
    %330 = arith.negf %329 : vector<2x8xf32>
    %331 = math.exp %330 : vector<2x8xf32>
    %cst_79 = arith.constant 1.000000e+00 : f32
    %332 = vector.broadcast %cst_79 : f32 to vector<2x8xf32>
    %333 = arith.addf %332, %331 : vector<2x8xf32>
    %334 = arith.divf %332, %333 : vector<2x8xf32>
    %335 = vector.extract_strided_slice %303 {offsets = [0, 8], sizes = [2, 8], strides = [1, 1]} : vector<2x32xf32> to vector<2x8xf32>
    %336 = arith.negf %335 : vector<2x8xf32>
    %337 = math.exp %336 : vector<2x8xf32>
    %cst_80 = arith.constant 1.000000e+00 : f32
    %338 = vector.broadcast %cst_80 : f32 to vector<2x8xf32>
    %339 = arith.addf %338, %337 : vector<2x8xf32>
    %340 = arith.divf %338, %339 : vector<2x8xf32>
    %341 = vector.extract_strided_slice %303 {offsets = [0, 16], sizes = [2, 8], strides = [1, 1]} : vector<2x32xf32> to vector<2x8xf32>
    %342 = math.tanh %341 : vector<2x8xf32>
    %343 = vector.extract_strided_slice %303 {offsets = [0, 24], sizes = [2, 8], strides = [1, 1]} : vector<2x32xf32> to vector<2x8xf32>
    %344 = arith.negf %343 : vector<2x8xf32>
    %345 = math.exp %344 : vector<2x8xf32>
    %cst_81 = arith.constant 1.000000e+00 : f32
    %346 = vector.broadcast %cst_81 : f32 to vector<2x8xf32>
    %347 = arith.addf %346, %345 : vector<2x8xf32>
    %348 = arith.divf %346, %347 : vector<2x8xf32>
    %349 = arith.mulf %340, %280 : vector<2x8xf32>
    %350 = arith.mulf %334, %342 : vector<2x8xf32>
    %351 = arith.addf %349, %350 : vector<2x8xf32>
    %352 = math.tanh %351 : vector<2x8xf32>
    %353 = arith.mulf %348, %352 : vector<2x8xf32>
    %cst_82 = arith.constant dense<0.000000e+00> : vector<2x4xf32>
    %354 = tpu.matmul %353, %1, %cst_82 {dimension_numbers = #tpu.dot_dimension_numbers<[1], [0], [0], [1], [0, 0, 1, 1], [], []>} : vector<2x8xf32>, vector<8x4xf32>, vector<2x4xf32> -> vector<2x4xf32>
    %355 = arith.addf %354, %4 : vector<2x4xf32>
    %cst_83 = arith.constant dense<0xFF800000> : vector<2xf32>
    %356 = vector.multi_reduction <maximumf>, %355, %cst_83 [1] : vector<2x4xf32> to vector<2xf32>
    %357 = vector.shape_cast %356 : vector<2xf32> to vector<2x1xf32>
    %358 = vector.broadcast %357 : vector<2x1xf32> to vector<2x4xf32>
    %359 = arith.subf %355, %358 : vector<2x4xf32>
    %360 = math.exp %359 : vector<2x4xf32>
    %cst_84 = arith.constant dense<0.000000e+00> : vector<2xf32>
    %361 = vector.multi_reduction <add>, %360, %cst_84 [1] : vector<2x4xf32> to vector<2xf32>
    %362 = vector.shape_cast %361 : vector<2xf32> to vector<2x1xf32>
    %363 = vector.broadcast %362 : vector<2x1xf32> to vector<2x4xf32>
    %364 = arith.divf %360, %363 : vector<2x4xf32>
    %365 = tpu.concatenate %328, %364, %353 in 1 : vector<2x32xf32>, vector<2x4xf32>, vector<2x8xf32> -> vector<2x44xf32>
    %cst_85 = arith.constant dense<0.000000e+00> : vector<2x160xf32>
    %366 = tpu.matmul %365, %0, %cst_85 {dimension_numbers = #tpu.dot_dimension_numbers<[1], [0], [0], [1], [0, 0, 1, 1], [], []>} : vector<2x44xf32>, vector<44x160xf32>, vector<2x160xf32> -> vector<2x160xf32>
    %c5 = arith.constant 5 : index
    %c0_86 = arith.constant 0 : index
    %c0_87 = arith.constant 0 : index
    %367 = vector.load %arg0[%c5, %c0_86, %c0_87] : memref<8x2x128xf32, #tpu.memory_space<vmem>>, vector<1x2x128xf32>
    %368 = vector.shape_cast %367 : vector<1x2x128xf32> to vector<2x128xf32>
    %369 = vector.extract_strided_slice %366 {offsets = [0, 0], sizes = [2, 128], strides = [1, 1]} : vector<2x160xf32> to vector<2x128xf32>
    %370 = arith.addf %368, %369 : vector<2x128xf32>
    %c5_88 = arith.constant 5 : index
    %c0_89 = arith.constant 0 : index
    %c0_90 = arith.constant 0 : index
    %371 = vector.load %arg1[%c5_88, %c0_89, %c0_90] : memref<8x2x32xf32, #tpu.memory_space<vmem>>, vector<1x2x32xf32>
    %372 = vector.shape_cast %371 : vector<1x2x32xf32> to vector<2x32xf32>
    %373 = vector.extract_strided_slice %366 {offsets = [0, 128], sizes = [2, 32], strides = [1, 1]} : vector<2x160xf32> to vector<2x32xf32>
    %374 = arith.addf %372, %373 : vector<2x32xf32>
    %375 = vector.extract_strided_slice %370 {offsets = [0, 0], sizes = [2, 32], strides = [1, 1]} : vector<2x128xf32> to vector<2x32xf32>
    %376 = arith.negf %375 : vector<2x32xf32>
    %377 = math.exp %376 : vector<2x32xf32>
    %cst_91 = arith.constant 1.000000e+00 : f32
    %378 = vector.broadcast %cst_91 : f32 to vector<2x32xf32>
    %379 = arith.addf %378, %377 : vector<2x32xf32>
    %380 = arith.divf %378, %379 : vector<2x32xf32>
    %381 = vector.extract_strided_slice %370 {offsets = [0, 32], sizes = [2, 32], strides = [1, 1]} : vector<2x128xf32> to vector<2x32xf32>
    %382 = arith.negf %381 : vector<2x32xf32>
    %383 = math.exp %382 : vector<2x32xf32>
    %cst_92 = arith.constant 1.000000e+00 : f32
    %384 = vector.broadcast %cst_92 : f32 to vector<2x32xf32>
    %385 = arith.addf %384, %383 : vector<2x32xf32>
    %386 = arith.divf %384, %385 : vector<2x32xf32>
    %387 = vector.extract_strided_slice %370 {offsets = [0, 64], sizes = [2, 32], strides = [1, 1]} : vector<2x128xf32> to vector<2x32xf32>
    %388 = math.tanh %387 : vector<2x32xf32>
    %389 = vector.extract_strided_slice %370 {offsets = [0, 96], sizes = [2, 32], strides = [1, 1]} : vector<2x128xf32> to vector<2x32xf32>
    %390 = arith.negf %389 : vector<2x32xf32>
    %391 = math.exp %390 : vector<2x32xf32>
    %cst_93 = arith.constant 1.000000e+00 : f32
    %392 = vector.broadcast %cst_93 : f32 to vector<2x32xf32>
    %393 = arith.addf %392, %391 : vector<2x32xf32>
    %394 = arith.divf %392, %393 : vector<2x32xf32>
    %395 = arith.mulf %386, %326 : vector<2x32xf32>
    %396 = arith.mulf %380, %388 : vector<2x32xf32>
    %397 = arith.addf %395, %396 : vector<2x32xf32>
    %398 = math.tanh %397 : vector<2x32xf32>
    %399 = arith.mulf %394, %398 : vector<2x32xf32>
    %400 = vector.extract_strided_slice %374 {offsets = [0, 0], sizes = [2, 8], strides = [1, 1]} : vector<2x32xf32> to vector<2x8xf32>
    %401 = arith.negf %400 : vector<2x8xf32>
    %402 = math.exp %401 : vector<2x8xf32>
    %cst_94 = arith.constant 1.000000e+00 : f32
    %403 = vector.broadcast %cst_94 : f32 to vector<2x8xf32>
    %404 = arith.addf %403, %402 : vector<2x8xf32>
    %405 = arith.divf %403, %404 : vector<2x8xf32>
    %406 = vector.extract_strided_slice %374 {offsets = [0, 8], sizes = [2, 8], strides = [1, 1]} : vector<2x32xf32> to vector<2x8xf32>
    %407 = arith.negf %406 : vector<2x8xf32>
    %408 = math.exp %407 : vector<2x8xf32>
    %cst_95 = arith.constant 1.000000e+00 : f32
    %409 = vector.broadcast %cst_95 : f32 to vector<2x8xf32>
    %410 = arith.addf %409, %408 : vector<2x8xf32>
    %411 = arith.divf %409, %410 : vector<2x8xf32>
    %412 = vector.extract_strided_slice %374 {offsets = [0, 16], sizes = [2, 8], strides = [1, 1]} : vector<2x32xf32> to vector<2x8xf32>
    %413 = math.tanh %412 : vector<2x8xf32>
    %414 = vector.extract_strided_slice %374 {offsets = [0, 24], sizes = [2, 8], strides = [1, 1]} : vector<2x32xf32> to vector<2x8xf32>
    %415 = arith.negf %414 : vector<2x8xf32>
    %416 = math.exp %415 : vector<2x8xf32>
    %cst_96 = arith.constant 1.000000e+00 : f32
    %417 = vector.broadcast %cst_96 : f32 to vector<2x8xf32>
    %418 = arith.addf %417, %416 : vector<2x8xf32>
    %419 = arith.divf %417, %418 : vector<2x8xf32>
    %420 = arith.mulf %411, %351 : vector<2x8xf32>
    %421 = arith.mulf %405, %413 : vector<2x8xf32>
    %422 = arith.addf %420, %421 : vector<2x8xf32>
    %423 = math.tanh %422 : vector<2x8xf32>
    %424 = arith.mulf %419, %423 : vector<2x8xf32>
    %cst_97 = arith.constant dense<0.000000e+00> : vector<2x4xf32>
    %425 = tpu.matmul %424, %1, %cst_97 {dimension_numbers = #tpu.dot_dimension_numbers<[1], [0], [0], [1], [0, 0, 1, 1], [], []>} : vector<2x8xf32>, vector<8x4xf32>, vector<2x4xf32> -> vector<2x4xf32>
    %426 = arith.addf %425, %4 : vector<2x4xf32>
    %cst_98 = arith.constant dense<0xFF800000> : vector<2xf32>
    %427 = vector.multi_reduction <maximumf>, %426, %cst_98 [1] : vector<2x4xf32> to vector<2xf32>
    %428 = vector.shape_cast %427 : vector<2xf32> to vector<2x1xf32>
    %429 = vector.broadcast %428 : vector<2x1xf32> to vector<2x4xf32>
    %430 = arith.subf %426, %429 : vector<2x4xf32>
    %431 = math.exp %430 : vector<2x4xf32>
    %cst_99 = arith.constant dense<0.000000e+00> : vector<2xf32>
    %432 = vector.multi_reduction <add>, %431, %cst_99 [1] : vector<2x4xf32> to vector<2xf32>
    %433 = vector.shape_cast %432 : vector<2xf32> to vector<2x1xf32>
    %434 = vector.broadcast %433 : vector<2x1xf32> to vector<2x4xf32>
    %435 = arith.divf %431, %434 : vector<2x4xf32>
    %436 = tpu.concatenate %399, %435, %424 in 1 : vector<2x32xf32>, vector<2x4xf32>, vector<2x8xf32> -> vector<2x44xf32>
    %cst_100 = arith.constant dense<0.000000e+00> : vector<2x160xf32>
    %437 = tpu.matmul %436, %0, %cst_100 {dimension_numbers = #tpu.dot_dimension_numbers<[1], [0], [0], [1], [0, 0, 1, 1], [], []>} : vector<2x44xf32>, vector<44x160xf32>, vector<2x160xf32> -> vector<2x160xf32>
    %c6 = arith.constant 6 : index
    %c0_101 = arith.constant 0 : index
    %c0_102 = arith.constant 0 : index
    %438 = vector.load %arg0[%c6, %c0_101, %c0_102] : memref<8x2x128xf32, #tpu.memory_space<vmem>>, vector<1x2x128xf32>
    %439 = vector.shape_cast %438 : vector<1x2x128xf32> to vector<2x128xf32>
    %440 = vector.extract_strided_slice %437 {offsets = [0, 0], sizes = [2, 128], strides = [1, 1]} : vector<2x160xf32> to vector<2x128xf32>
    %441 = arith.addf %439, %440 : vector<2x128xf32>
    %c6_103 = arith.constant 6 : index
    %c0_104 = arith.constant 0 : index
    %c0_105 = arith.constant 0 : index
    %442 = vector.load %arg1[%c6_103, %c0_104, %c0_105] : memref<8x2x32xf32, #tpu.memory_space<vmem>>, vector<1x2x32xf32>
    %443 = vector.shape_cast %442 : vector<1x2x32xf32> to vector<2x32xf32>
    %444 = vector.extract_strided_slice %437 {offsets = [0, 128], sizes = [2, 32], strides = [1, 1]} : vector<2x160xf32> to vector<2x32xf32>
    %445 = arith.addf %443, %444 : vector<2x32xf32>
    %446 = vector.extract_strided_slice %441 {offsets = [0, 0], sizes = [2, 32], strides = [1, 1]} : vector<2x128xf32> to vector<2x32xf32>
    %447 = arith.negf %446 : vector<2x32xf32>
    %448 = math.exp %447 : vector<2x32xf32>
    %cst_106 = arith.constant 1.000000e+00 : f32
    %449 = vector.broadcast %cst_106 : f32 to vector<2x32xf32>
    %450 = arith.addf %449, %448 : vector<2x32xf32>
    %451 = arith.divf %449, %450 : vector<2x32xf32>
    %452 = vector.extract_strided_slice %441 {offsets = [0, 32], sizes = [2, 32], strides = [1, 1]} : vector<2x128xf32> to vector<2x32xf32>
    %453 = arith.negf %452 : vector<2x32xf32>
    %454 = math.exp %453 : vector<2x32xf32>
    %cst_107 = arith.constant 1.000000e+00 : f32
    %455 = vector.broadcast %cst_107 : f32 to vector<2x32xf32>
    %456 = arith.addf %455, %454 : vector<2x32xf32>
    %457 = arith.divf %455, %456 : vector<2x32xf32>
    %458 = vector.extract_strided_slice %441 {offsets = [0, 64], sizes = [2, 32], strides = [1, 1]} : vector<2x128xf32> to vector<2x32xf32>
    %459 = math.tanh %458 : vector<2x32xf32>
    %460 = vector.extract_strided_slice %441 {offsets = [0, 96], sizes = [2, 32], strides = [1, 1]} : vector<2x128xf32> to vector<2x32xf32>
    %461 = arith.negf %460 : vector<2x32xf32>
    %462 = math.exp %461 : vector<2x32xf32>
    %cst_108 = arith.constant 1.000000e+00 : f32
    %463 = vector.broadcast %cst_108 : f32 to vector<2x32xf32>
    %464 = arith.addf %463, %462 : vector<2x32xf32>
    %465 = arith.divf %463, %464 : vector<2x32xf32>
    %466 = arith.mulf %457, %397 : vector<2x32xf32>
    %467 = arith.mulf %451, %459 : vector<2x32xf32>
    %468 = arith.addf %466, %467 : vector<2x32xf32>
    %469 = math.tanh %468 : vector<2x32xf32>
    %470 = arith.mulf %465, %469 : vector<2x32xf32>
    %471 = vector.extract_strided_slice %445 {offsets = [0, 0], sizes = [2, 8], strides = [1, 1]} : vector<2x32xf32> to vector<2x8xf32>
    %472 = arith.negf %471 : vector<2x8xf32>
    %473 = math.exp %472 : vector<2x8xf32>
    %cst_109 = arith.constant 1.000000e+00 : f32
    %474 = vector.broadcast %cst_109 : f32 to vector<2x8xf32>
    %475 = arith.addf %474, %473 : vector<2x8xf32>
    %476 = arith.divf %474, %475 : vector<2x8xf32>
    %477 = vector.extract_strided_slice %445 {offsets = [0, 8], sizes = [2, 8], strides = [1, 1]} : vector<2x32xf32> to vector<2x8xf32>
    %478 = arith.negf %477 : vector<2x8xf32>
    %479 = math.exp %478 : vector<2x8xf32>
    %cst_110 = arith.constant 1.000000e+00 : f32
    %480 = vector.broadcast %cst_110 : f32 to vector<2x8xf32>
    %481 = arith.addf %480, %479 : vector<2x8xf32>
    %482 = arith.divf %480, %481 : vector<2x8xf32>
    %483 = vector.extract_strided_slice %445 {offsets = [0, 16], sizes = [2, 8], strides = [1, 1]} : vector<2x32xf32> to vector<2x8xf32>
    %484 = math.tanh %483 : vector<2x8xf32>
    %485 = vector.extract_strided_slice %445 {offsets = [0, 24], sizes = [2, 8], strides = [1, 1]} : vector<2x32xf32> to vector<2x8xf32>
    %486 = arith.negf %485 : vector<2x8xf32>
    %487 = math.exp %486 : vector<2x8xf32>
    %cst_111 = arith.constant 1.000000e+00 : f32
    %488 = vector.broadcast %cst_111 : f32 to vector<2x8xf32>
    %489 = arith.addf %488, %487 : vector<2x8xf32>
    %490 = arith.divf %488, %489 : vector<2x8xf32>
    %491 = arith.mulf %482, %422 : vector<2x8xf32>
    %492 = arith.mulf %476, %484 : vector<2x8xf32>
    %493 = arith.addf %491, %492 : vector<2x8xf32>
    %494 = math.tanh %493 : vector<2x8xf32>
    %495 = arith.mulf %490, %494 : vector<2x8xf32>
    %cst_112 = arith.constant dense<0.000000e+00> : vector<2x4xf32>
    %496 = tpu.matmul %495, %1, %cst_112 {dimension_numbers = #tpu.dot_dimension_numbers<[1], [0], [0], [1], [0, 0, 1, 1], [], []>} : vector<2x8xf32>, vector<8x4xf32>, vector<2x4xf32> -> vector<2x4xf32>
    %497 = arith.addf %496, %4 : vector<2x4xf32>
    %cst_113 = arith.constant dense<0xFF800000> : vector<2xf32>
    %498 = vector.multi_reduction <maximumf>, %497, %cst_113 [1] : vector<2x4xf32> to vector<2xf32>
    %499 = vector.shape_cast %498 : vector<2xf32> to vector<2x1xf32>
    %500 = vector.broadcast %499 : vector<2x1xf32> to vector<2x4xf32>
    %501 = arith.subf %497, %500 : vector<2x4xf32>
    %502 = math.exp %501 : vector<2x4xf32>
    %cst_114 = arith.constant dense<0.000000e+00> : vector<2xf32>
    %503 = vector.multi_reduction <add>, %502, %cst_114 [1] : vector<2x4xf32> to vector<2xf32>
    %504 = vector.shape_cast %503 : vector<2xf32> to vector<2x1xf32>
    %505 = vector.broadcast %504 : vector<2x1xf32> to vector<2x4xf32>
    %506 = arith.divf %502, %505 : vector<2x4xf32>
    %507 = tpu.concatenate %470, %506, %495 in 1 : vector<2x32xf32>, vector<2x4xf32>, vector<2x8xf32> -> vector<2x44xf32>
    %cst_115 = arith.constant dense<0.000000e+00> : vector<2x160xf32>
    %508 = tpu.matmul %507, %0, %cst_115 {dimension_numbers = #tpu.dot_dimension_numbers<[1], [0], [0], [1], [0, 0, 1, 1], [], []>} : vector<2x44xf32>, vector<44x160xf32>, vector<2x160xf32> -> vector<2x160xf32>
    %c7 = arith.constant 7 : index
    %c0_116 = arith.constant 0 : index
    %c0_117 = arith.constant 0 : index
    %509 = vector.load %arg0[%c7, %c0_116, %c0_117] : memref<8x2x128xf32, #tpu.memory_space<vmem>>, vector<1x2x128xf32>
    %510 = vector.shape_cast %509 : vector<1x2x128xf32> to vector<2x128xf32>
    %511 = vector.extract_strided_slice %508 {offsets = [0, 0], sizes = [2, 128], strides = [1, 1]} : vector<2x160xf32> to vector<2x128xf32>
    %512 = arith.addf %510, %511 : vector<2x128xf32>
    %513 = vector.extract_strided_slice %512 {offsets = [0, 0], sizes = [2, 32], strides = [1, 1]} : vector<2x128xf32> to vector<2x32xf32>
    %514 = arith.negf %513 : vector<2x32xf32>
    %515 = math.exp %514 : vector<2x32xf32>
    %cst_118 = arith.constant 1.000000e+00 : f32
    %516 = vector.broadcast %cst_118 : f32 to vector<2x32xf32>
    %517 = arith.addf %516, %515 : vector<2x32xf32>
    %518 = arith.divf %516, %517 : vector<2x32xf32>
    %519 = vector.extract_strided_slice %512 {offsets = [0, 32], sizes = [2, 32], strides = [1, 1]} : vector<2x128xf32> to vector<2x32xf32>
    %520 = arith.negf %519 : vector<2x32xf32>
    %521 = math.exp %520 : vector<2x32xf32>
    %cst_119 = arith.constant 1.000000e+00 : f32
    %522 = vector.broadcast %cst_119 : f32 to vector<2x32xf32>
    %523 = arith.addf %522, %521 : vector<2x32xf32>
    %524 = arith.divf %522, %523 : vector<2x32xf32>
    %525 = vector.extract_strided_slice %512 {offsets = [0, 64], sizes = [2, 32], strides = [1, 1]} : vector<2x128xf32> to vector<2x32xf32>
    %526 = math.tanh %525 : vector<2x32xf32>
    %527 = vector.extract_strided_slice %512 {offsets = [0, 96], sizes = [2, 32], strides = [1, 1]} : vector<2x128xf32> to vector<2x32xf32>
    %528 = arith.negf %527 : vector<2x32xf32>
    %529 = math.exp %528 : vector<2x32xf32>
    %cst_120 = arith.constant 1.000000e+00 : f32
    %530 = vector.broadcast %cst_120 : f32 to vector<2x32xf32>
    %531 = arith.addf %530, %529 : vector<2x32xf32>
    %532 = arith.divf %530, %531 : vector<2x32xf32>
    %533 = arith.mulf %524, %468 : vector<2x32xf32>
    %534 = arith.mulf %518, %526 : vector<2x32xf32>
    %535 = arith.addf %533, %534 : vector<2x32xf32>
    %536 = math.tanh %535 : vector<2x32xf32>
    %537 = arith.mulf %532, %536 : vector<2x32xf32>
    %538 = tpu.concatenate %44, %115, %186, %257, %328, %399, %470, %537 in 0 : vector<2x32xf32>, vector<2x32xf32>, vector<2x32xf32>, vector<2x32xf32>, vector<2x32xf32>, vector<2x32xf32>, vector<2x32xf32>, vector<2x32xf32> -> vector<16x32xf32>
    %c0_121 = arith.constant 0 : index
    %c0_122 = arith.constant 0 : index
    %539 = vector.load %arg5[%c0_121, %c0_122] : memref<32x16xf32, #tpu.memory_space<vmem>>, vector<32x16xf32>
    %cst_123 = arith.constant dense<0.000000e+00> : vector<16x16xf32>
    %540 = tpu.matmul %538, %539, %cst_123 {dimension_numbers = #tpu.dot_dimension_numbers<[1], [0], [0], [1], [0, 0, 1, 1], [], []>} : vector<16x32xf32>, vector<32x16xf32>, vector<16x16xf32> -> vector<16x16xf32>
    %c0_124 = arith.constant 0 : index
    %c0_125 = arith.constant 0 : index
    %541 = vector.load %arg6[%c0_124, %c0_125] : memref<1x16xf32, #tpu.memory_space<vmem>>, vector<1x16xf32>
    %542 = vector.broadcast %541 : vector<1x16xf32> to vector<16x16xf32>
    %543 = arith.addf %540, %542 : vector<16x16xf32>
    %cst_126 = arith.constant dense<0xFF800000> : vector<16xf32>
    %544 = vector.multi_reduction <maximumf>, %543, %cst_126 [1] : vector<16x16xf32> to vector<16xf32>
    %545 = vector.shape_cast %544 : vector<16xf32> to vector<16x1xf32>
    %546 = vector.broadcast %545 : vector<16x1xf32> to vector<16x16xf32>
    %547 = arith.subf %543, %546 : vector<16x16xf32>
    %548 = math.exp %547 : vector<16x16xf32>
    %cst_127 = arith.constant dense<0.000000e+00> : vector<16xf32>
    %549 = vector.multi_reduction <add>, %548, %cst_127 [1] : vector<16x16xf32> to vector<16xf32>
    %550 = vector.shape_cast %549 : vector<16xf32> to vector<16x1xf32>
    %551 = math.log %550 : vector<16x1xf32>
    %552 = arith.addf %551, %545 : vector<16x1xf32>
    %553 = vector.broadcast %552 : vector<16x1xf32> to vector<16x16xf32>
    %554 = arith.subf %543, %553 : vector<16x16xf32>
    %c0_128 = arith.constant 0 : index
    %c0_129 = arith.constant 0 : index
    %555 = vector.load %arg7[%c0_128, %c0_129] : memref<16x16xf32, #tpu.memory_space<vmem>>, vector<16x16xf32>
    tpu.vector_store %arg7[%c0_128, %c0_129], %554 {strides = array<i32>} : memref<16x16xf32, #tpu.memory_space<vmem>>, vector<16x16xf32>,
    return
  }
}

</mosaic_0001>

<bundles_post_ra>
// kernel: tpu_custom_call.1
= control target key start
LH: loop header
LB: loop body
LE: loop exit
PB: predicated region body
PF: predicated region fallthrough
CT: control target
= control target key end

     0   :  { %12 = vsyncpa [#allocation3], 0  ;;  %s2812_s0 = inlined_call_operand.vmem [shape: f32[8,2,128], index: 0, kind: input, shape index: {}]   ;;  %s2813_s1 = inlined_call_operand.vmem [shape: f32[8,2,32], index: 1, kind: input, shape index: {}]   ;;  %s2814_s2 = inlined_call_operand.hbm [shape: f32[44,160], index: 2, kind: input, shape index: {}]   ;;  %s2815_s3 = inlined_call_operand.vmem [shape: f32[8,4], index: 3, kind: input, shape index: {}]   ;;  %s2816_s4 = inlined_call_operand.vmem [shape: f32[1,4], index: 4, kind: input, shape index: {}]   ;;  %s2817_s5 = inlined_call_operand.vmem [shape: f32[32,16], index: 5, kind: input, shape index: {}]   ;;  %s2818_s6 = inlined_call_operand.vmem [shape: f32[1,16], index: 6, kind: input, shape index: {}]   ;;  %s2819_s7 = inlined_call_operand.hbm [shape: f32[16,16], index: 7, kind: output, shape index: {}]  }
   0x1   :  { %13 = vsyncpa [#allocation4], 0  ;;  %s2276_s24 = smov [#allocation2]  }
   0x2   :  { %s23_s25 = sshll.u32 %s2276_s24, 4  ;;  %s24_s25 = int_to_ptr.vmem [resolvable:$true] %s23_s25 }
   0x3   :  { %s2240_s26 = scalar_lea.vmem %s24_s25, 1536  ;;  %p2245_p1 = scmp.lt.s32.totalorder %s24_s25, %s24_s25 }
   0x4   :  { %p2241_p0 = scmp.ne.s32.totalorder %s24_s25, %s2240_s26  ;;  %p2246_p2 = scmp.lt.s32.totalorder %s2240_s26, %s2240_s26 }
   0x6   :  { %p2247_p3 = por %p2246_p2, %p2245_p1 }
   0x8   :  { %p2248_p4 = pnand %p2247_p3, %p2241_p0 }
   0xa   :  { %2251 = shalt.err (!%p2248_p4)
}
   0xb   :  { %s2277_s27 = smov 256   ;;  %s2278_s28 = smov 16  }
   0xc   :  { %29 = dma.hbm_to_vmem [thread:$0]  %s2814_s2, 1536, %s24_s25, [#allocation3], %s2277_s27, %s2277_s27, %s2278_s28  }
   0xd   :  { %2272 = dma.done.wait [#allocation3], 1536  }
   0xe   :  { %2273 = vsyncadd [#allocation3], 4294965760  ;;  %v2279_v0 = vmov 0.0   ;;  %vm65_vm0 = vcmask 1043456   ;;  %v2335_v1 = vld [vmem:[#allocation2 + $0x58] sm:$0xf] }
   0xf   :  { %136 = vmatprep.mubr.f32.mxu0 %v2279_v0  ;;  %2005 = vmatprep.subr.mxu1 %v2279_v0  ;;  %v2337_v2 = vld [vmem:[#allocation2 + $0x50] sm:$0xf]  ;;  %v2339_v3 = vld [vmem:[#allocation2 + $0x48] sm:$0xff]  ;;  %v2343_v4 = vld [vmem:[#allocation2 + $0x40] sm:$0xff]  ;;  %s2280_s9 = smov 112   ;;  %s2281_s12 = smov 8  }
  0x10   :  { %1924 = vmatprep.subr.msk.mxu0 %vm65_vm0, %v2335_v1  ;;  %v2347_v5 = vld [vmem:[#allocation2 + $0x38] sm:$0xff]  ;;  %v2350_v6 = vld [vmem:[#allocation2 + $0x30] sm:$0xff]  ;;  %v2353_v7 = vld [vmem:[#allocation2 + $0x28] sm:$0xff]  ;;  %s2282_s13 = smov 64   ;;  %s2283_s16 = smov 32   ;;  %vm2284_vm1 = vmmov 0  }
  0x11   :  { %1925 = vmatpush1.msk.msra.mxu0 %vm65_vm0, %v2337_v2  ;;  %v2356_v8 = vld [vmem:[#allocation2 + $0x20] sm:$0xff]  ;;  %v2359_v9 = vld [vmem:[#allocation2 + $0x18] sm:$0xff]  ;;  %v2362_v10 = vld [vmem:[#allocation2 + $0x10] sm:$0xff]  ;;  %2007 = vmatprep.mubr.msk.f32.mxu1 %vm2284_vm1, %v2279_v0  ;;  %vm198_vm2 = vcmask 64512   ;;  %vm271_vm3 = vcmask 25600   ;;  %s2286_s19 = smov 12  }
  0x12   :  { %94 = vmatprep.subr.mxu0 %v2339_v3  ;;  %v2365_v11 = vld [vmem:[#allocation2 + $0x8] sm:$0xff]  ;;  %v2368_v12 = vld [vmem:[#allocation2] sm:$0xff]  ;;  %vm294_vm4 = vcmask 261120   ;;  %vm296_vm5 = vcmask 293888   ;;  %vm61_vm6 = vcmask 359424   ;;  %vm1773_vm7 = vcmask 1041408  }
  0x13   :  { %95 = vmatpush1.msra.mxu0 %v2343_v4  ;;  %v145_v14 = vld [vmem:[%s2813_s1] sm:$0x3]  ;;  %vm1776_vm8 = vcmask 1045504   ;;  %vm1877_vm9 = vcmask 130048  }
  0x14   :  { %96 = vmatprep.subr.mxu0 %v2347_v5  ;;  %v143_v21 = vld [vmem:[%s2812_s0] sm:$0x3] }
  0x15   :  { %97 = vmatpush1.msra.mxu0 %v2350_v6  ;;  %v2390_v36 = vld [vmem:[%s2815_s3] sm:$0xff]  ;;  %s2285_s3 = smov 104  }
  0x16   :  { %98 = vmatprep.subr.mxu0 %v2353_v7  ;;  %2006 = vmatpush3.msra.mxu1 %v2390_v36  ;;  %v2423_v41 = vld [vmem:[%s2816_s4] ss:$0 sm:$0xff] }
  0x17   :  { %99 = vmatpush1.msra.mxu0 %v2356_v8  ;;  %1929 = vmatprep.subr.msk.mxu1 %vm65_vm0, %v2335_v1 }
  0x18   :  { %100 = vmatprep.subr.mxu0 %v2359_v9 }
  0x19   :  { %101 = vmatpush1.msra.mxu0 %v2362_v10 }
  0x1a   :  { %102 = vmatprep.subr.mxu0 %v2365_v11 }
  0x1b   :  { %103 = vmatpush1.msra.mxu0 %v2368_v12 }
  0x1c   :  { %137 = vmatmul.mubr.f32.vlgmr.msra.gmra.mxu0 %v2279_v0  ;;  %2010 = vmatprep.subr.mxu0 %v2279_v0 }
  0x1d   :  { %2011 = vmatpush3.msra.mxu0 %v2390_v36  ;;  %2012 = vmatprep.mubr.msk.f32.mxu0 %vm2284_vm1, %v2279_v0 }
  0x1e   :  { %2015 = vmatprep.subr.mxu0 %v2279_v0 }
  0xdc   :  { %v138_v13 = vpop.f32.mrf.mxu0 }
  0xdd   :  { %v144_v22 = vadd.f32 %v143_v21, %v138_v13 }
  0xde   :  { %v140_v15 = vpop.f32.mrf.mxu0 }
  0xdf   :  { %v146_v16 = vadd.f32 %v145_v14, %v140_v15  ;;  %v1926_v27 = vmul.f32 -1.442695, %v144_v22  ;;  %v1933_v15 = vld [vmem:[%s2813_s1 + $0x2] sm:$0x3] }
  0xe1   :  { %2064 = vtanh.f32 %v146_v16  ;;  %v1927_v18 = vmul.f32 -1.442695, %v146_v16 }
  0xe3   :  { %2066 = vpow2.f32 %v1927_v18 }
  0xee   :  { %v2065_v17 = vpop.eup %2064 }
  0xef   :  { %180 = vrot.lane.b32.xlu0 %v2065_v17, %s2280_s9 }
  0xf0   :  { %v2067_v19 = vpop.eup %2066 }
  0xf1   :  { %v174_v20 = vadd.f32 1.0, %v2067_v19 }
  0xf3   :  { %2068 = vrcp.f32 %v174_v20 }
  0xf4   :  { %2070 = vtanh.f32 %v144_v22 }
  0xf5   :  { %2072 = vpow2.f32 %v1926_v27 }
 0x100   :  { %v2069_v23 = vpop.eup %2068 }
 0x101   :  { %v2071_v26 = vpop.eup %2070  ;;  %v178_v30 = vmul.f32 0.0, %v2069_v23 }
 0x102   :  { %v2073_v28 = vpop.eup %2072 }
 0x103   :  { %v150_v29 = vadd.f32 1.0, %v2073_v28 }
 0x105   :  { %2074 = vrcp.f32 %v150_v29 }
 0x112   :  { %v2075_v33 = vpop.eup %2074 }
 0x113   :  { %v154_v44 = vmul.f32 0.0, %v2075_v33 }
 0x161   :  { %v181_v24 = vpop.permute.xlu0 %180 }
 0x162   :  { %v183_v25 = vmul.f32 %v2069_v23, %v181_v24 }
 0x164   :  { %185 = vrot.lane.b32.xlu0 %v183_v25, %s2281_s12 }
 0x168   :  { %156 = vrot.lane.b32.xlu0 %v2071_v26, %s2282_s13  ;;  %v1932_v26 = vld [vmem:[%s2812_s0 + $0x2] sm:$0x3] }
 0x1d6   :  { %v186_v31 = vpop.permute.xlu0 %185 }
 0x1d7   :  { %v2384_v32 = vadd.f32 %v186_v31, %v178_v30 }
 0x1d9   :  { %2076 = vtanh.f32 %v2384_v32 }
 0x1da   :  { %v157_v34 = vpop.permute.xlu0 %156 }
 0x1db   :  { %v159_v35 = vmul.f32 %v2075_v33, %v157_v34 }
 0x1dd   :  { %161 = vrot.lane.b32.xlu0 %v159_v35, %s2283_s16 }
 0x1e6   :  { %v2077_v37 = vpop.eup %2076 }
 0x1e7   :  { %191 = vrot.lane.b32.xlu1 %v2077_v37, %s2278_s28 }
 0x24f   :  { %v162_v42 = vpop.permute.xlu0 %161 }
 0x250   :  { %v2426_v47 = vadd.f32 %v162_v42, %v154_v44 }
 0x252   :  { %2078 = vtanh.f32 %v2426_v47 }
 0x259   :  { %v192_v38 = vpop.permute.xlu1 %191 }
 0x25a   :  { %v194_v39 = vmul.f32 %v2069_v23, %v192_v38 }
 0x25c   :  { %196 = vrot.lane.b32.xlu1 %v194_v39, %s2285_s3 }
 0x25f   :  { %v2079_v49 = vpop.eup %2078 }
 0x2ce   :  { %v197_v40 = vpop.permute.xlu1 %196 }
 0x2cf   :  { %2008 = vmatmul.mubr.msk.f32.vlgmr.msra.gmra.mxu1 %vm198_vm2, %v197_v40 }
 0x2d0   :  { %1930 = vmatpush1.msk.msra.mxu1 %vm65_vm0, %v2337_v2  ;;  %365 = vmatprep.mubr.f32.mxu1 %v2279_v0 }
 0x2d1   :  { %323 = vmatprep.subr.mxu1 %v2339_v3 }
 0x2d2   :  { %324 = vmatpush1.msra.mxu1 %v2343_v4 }
 0x2d3   :  { %325 = vmatprep.subr.mxu1 %v2347_v5 }
 0x2d4   :  { %326 = vmatpush1.msra.mxu1 %v2350_v6 }
 0x2d5   :  { %327 = vmatprep.subr.mxu1 %v2353_v7 }
 0x2d6   :  { %328 = vmatpush1.msra.mxu1 %v2356_v8 }
 0x2d7   :  { %329 = vmatprep.subr.mxu1 %v2359_v9 }
 0x2d8   :  { %330 = vmatpush1.msra.mxu1 %v2362_v10 }
 0x2d9   :  { %331 = vmatprep.subr.mxu1 %v2365_v11 }
 0x2da   :  { %332 = vmatpush1.msra.mxu1 %v2368_v12 }
 0x2db   :  { %1937 = vmatprep.subr.msk.mxu1 %vm65_vm0, %v2335_v1 }
 0x38f   :  { %v267_v43 = vpop.f32.mrf.mxu1 }
 0x390   :  { %v268_v45 = vadd.f32 %v2423_v41, %v267_v43 }
 0x391   :  { %v2009_v46 = vpop.f32.mrf.mxu1 }
 0x392   :  { %v272_v48 = vsel %vm271_vm3, %v268_v45, -inf }
 0x393   :  { %273 = vmax.xlane.f32.xlu1 %v272_v48 }
 0x3a4   :  { %167 = vrot.lane.b32.xlu1 %v2079_v49, %s2282_s13 }
 0x41c   :  { %v274_v50 = vpop.xlane.xlu1 %273 }
 0x41d   :  { %v275_v51 = vsub.f32 %v268_v45, %v274_v50 }
 0x41f   :  { %v276_v52 = vmul.f32 1.442695, %v275_v51 }
 0x420   :  { %v168_v55 = vpop.permute.xlu1 %167 }
 0x421   :  { %2080 = vpow2.f32 %v276_v52  ;;  %v2432_v56 = vmul.f32 %v2075_v33, %v168_v55 }
 0x42e   :  { %v2081_v53 = vpop.eup %2080 }
 0x42f   :  { %v278_v54 = vsel %vm271_vm3, %v2081_v53, 0.0 }
 0x430   :  { %279 = vadd.xlane.f32.xlu0 %v278_v54 }
 0x446   :  { %284 = vrot.lane.b32.xlu0 %v2432_v56, %s2283_s16 }
 0x4b9   :  { %v280_v57 = vpop.xlane.xlu0 %279 }
 0x4ba   :  { %2082 = vrcp.f32 %v280_v57 }
 0x4bd   :  { %v285_v61 = vpop.permute.xlu0 %284 }
 0x4c7   :  { %v2083_v58 = vpop.eup %2082 }
 0x4c8   :  { %v282_v59 = vmul.f32 %v2083_v58, %v2081_v53 }
 0x4ca   :  { %288 = vrot.lane.b32.xlu1 %v282_v59, %s2283_s16 }
 0x4ce   :  { %291 = vrot.lane.b32.xlu1 %v194_v39, %s2286_s19 }
 0x53c   :  { %v289_v60 = vpop.permute.xlu1 %288 }
 0x53d   :  { %v295_v62 = vsel %vm294_vm4, %v285_v61, %v289_v60 }
 0x540   :  { %v292_v63 = vpop.permute.xlu1 %291 }
 0x541   :  { %v297_v13 = vsel %vm296_vm5, %v295_v62, %v292_v63 }
 0x542   :  { %1931 = vmatmul.mubr.msk.f32.vlgmr.msra.gmra.mxu1 %vm61_vm6, %v297_v13 }
 0x543   :  { %1938 = vmatpush1.msk.msra.mxu1 %vm65_vm0, %v2337_v2  ;;  %592 = vmatprep.mubr.f32.mxu1 %v2279_v0 }
 0x544   :  { %550 = vmatprep.subr.mxu1 %v2339_v3 }
 0x545   :  { %551 = vmatpush1.msra.mxu1 %v2343_v4 }
 0x546   :  { %552 = vmatprep.subr.mxu1 %v2347_v5 }
 0x547   :  { %553 = vmatpush1.msra.mxu1 %v2350_v6 }
 0x548   :  { %554 = vmatprep.subr.mxu1 %v2353_v7 }
 0x549   :  { %555 = vmatpush1.msra.mxu1 %v2356_v8 }
 0x54a   :  { %556 = vmatprep.subr.mxu1 %v2359_v9 }
 0x54b   :  { %557 = vmatpush1.msra.mxu1 %v2362_v10 }
 0x54c   :  { %558 = vmatprep.subr.mxu1 %v2365_v11 }
 0x54d   :  { %559 = vmatpush1.msra.mxu1 %v2368_v12 }
 0x54e   :  { %2020 = vmatprep.subr.mxu1 %v2279_v0 }
 0x602   :  { %v367_v14 = vpop.f32.mrf.mxu1 }
 0x603   :  { %v374_v29 = vadd.f32 %v1932_v26, %v367_v14 }
 0x604   :  { %v369_v16 = vpop.f32.mrf.mxu1 }
 0x605   :  { %v377_v17 = vadd.f32 %v1933_v15, %v369_v16  ;;  %v1934_v33 = vmul.f32 -1.442695, %v374_v29 }
 0x607   :  { %2084 = vtanh.f32 %v377_v17  ;;  %v1935_v19 = vmul.f32 -1.442695, %v377_v17  ;;  %v1941_v17 = vld [vmem:[%s2813_s1 + $0x4] sm:$0x3] }
 0x609   :  { %2086 = vpow2.f32 %v1935_v19 }
 0x614   :  { %v2085_v18 = vpop.eup %2084 }
 0x615   :  { %411 = vrot.lane.b32.xlu0 %v2085_v18, %s2280_s9 }
 0x616   :  { %v2087_v20 = vpop.eup %2086 }
 0x617   :  { %v405_v21 = vadd.f32 1.0, %v2087_v20 }
 0x619   :  { %2088 = vrcp.f32 %v405_v21 }
 0x626   :  { %v2089_v22 = vpop.eup %2088 }
 0x627   :  { %v409_v25 = vmul.f32 %v2089_v22, %v2384_v32 }
 0x687   :  { %v412_v23 = vpop.permute.xlu0 %411 }
 0x688   :  { %v414_v24 = vmul.f32 %v2089_v22, %v412_v23 }
 0x68a   :  { %416 = vrot.lane.b32.xlu1 %v414_v24, %s2281_s12 }
 0x6fc   :  { %v417_v27 = vpop.permute.xlu1 %416 }
 0x6fd   :  { %v2464_v28 = vadd.f32 %v417_v27, %v409_v25 }
 0x6ff   :  { %2090 = vtanh.f32 %v2464_v28 }
 0x700   :  { %2092 = vtanh.f32 %v374_v29  ;;  %v1940_v29 = vld [vmem:[%s2812_s0 + $0x4] sm:$0x3] }
 0x701   :  { %2094 = vpow2.f32 %v1934_v33 }
 0x70c   :  { %v2091_v30 = vpop.eup %2090 }
 0x70d   :  { %422 = vrot.lane.b32.xlu0 %v2091_v30, %s2278_s28  ;;  %v2093_v31 = vpop.eup %2092 }
 0x70e   :  { %v2095_v32 = vpop.eup %2094 }
 0x70f   :  { %v381_v34 = vadd.f32 1.0, %v2095_v32 }
 0x711   :  { %387 = vrot.lane.b32.xlu0 %v2093_v31, %s2282_s13  ;;  %2096 = vrcp.f32 %v381_v34 }
 0x71e   :  { %v2097_v38 = vpop.eup %2096 }
 0x71f   :  { %v385_v45 = vmul.f32 %v2097_v38, %v2426_v47 }
 0x77f   :  { %v423_v35 = vpop.permute.xlu0 %422 }
 0x780   :  { %v425_v37 = vmul.f32 %v2089_v22, %v423_v35 }
 0x782   :  { %427 = vrot.lane.b32.xlu1 %v425_v37, %s2285_s3 }
 0x783   :  { %v388_v39 = vpop.permute.xlu0 %387 }
 0x784   :  { %v390_v40 = vmul.f32 %v2097_v38, %v388_v39 }
 0x786   :  { %392 = vrot.lane.b32.xlu0 %v390_v40, %s2283_s16 }
 0x7f4   :  { %v428_v42 = vpop.permute.xlu1 %427 }
 0x7f5   :  { %2013 = vmatmul.mubr.msk.f32.vlgmr.msra.gmra.mxu0 %vm198_vm2, %v428_v42 }
 0x7f6   :  { %2016 = vmatpush3.msra.mxu0 %v2390_v36  ;;  %2017 = vmatprep.mubr.msk.f32.mxu0 %vm2284_vm1, %v2279_v0 }
 0x7f7   :  { %1945 = vmatprep.subr.msk.mxu0 %vm65_vm0, %v2335_v1 }
 0x7f8   :  { %v393_v43 = vpop.permute.xlu0 %392 }
 0x7f9   :  { %v2479_v49 = vadd.f32 %v393_v43, %v385_v45 }
 0x7fb   :  { %2098 = vtanh.f32 %v2479_v49 }
 0x808   :  { %v2099_v51 = vpop.eup %2098 }
 0x8b5   :  { %v497_v44 = vpop.f32.mrf.mxu0 }
 0x8b6   :  { %v498_v46 = vadd.f32 %v2423_v41, %v497_v44 }
 0x8b7   :  { %v2014_v48 = vpop.f32.mrf.mxu0 }
 0x8b8   :  { %v501_v50 = vsel %vm271_vm3, %v498_v46, -inf }
 0x8b9   :  { %502 = vmax.xlane.f32.xlu1 %v501_v50 }
 0x8ca   :  { %398 = vrot.lane.b32.xlu1 %v2099_v51, %s2282_s13 }
 0x942   :  { %v503_v52 = vpop.xlane.xlu1 %502 }
 0x943   :  { %v504_v53 = vsub.f32 %v498_v46, %v503_v52 }
 0x945   :  { %v505_v54 = vmul.f32 1.442695, %v504_v53 }
 0x946   :  { %v399_v57 = vpop.permute.xlu1 %398 }
 0x947   :  { %2100 = vpow2.f32 %v505_v54  ;;  %v2485_v58 = vmul.f32 %v2097_v38, %v399_v57 }
 0x954   :  { %v2101_v55 = vpop.eup %2100 }
 0x955   :  { %v507_v47 = vsel %vm271_vm3, %v2101_v55, 0.0 }
 0x956   :  { %508 = vadd.xlane.f32.xlu0 %v507_v47 }
 0x96c   :  { %513 = vrot.lane.b32.xlu0 %v2485_v58, %s2283_s16 }
 0x9df   :  { %v509_v59 = vpop.xlane.xlu0 %508 }
 0x9e0   :  { %2102 = vrcp.f32 %v509_v59  ;;  %v1760_v59 = vrot.slane %v2485_v58, 6 }
 0x9e3   :  { %v514_v63 = vpop.permute.xlu0 %513 }
 0x9ed   :  { %v2103_v60 = vpop.eup %2102 }
 0x9ee   :  { %v511_v61 = vmul.f32 %v2103_v60, %v2101_v55 }
 0x9f0   :  { %517 = vrot.lane.b32.xlu1 %v511_v61, %s2283_s16 }
 0x9f4   :  { %520 = vrot.lane.b32.xlu1 %v425_v37, %s2286_s19 }
 0xa62   :  { %v518_v62 = vpop.permute.xlu1 %517 }
 0xa63   :  { %v523_v13 = vsel %vm294_vm4, %v514_v63, %v518_v62  ;;  %v1774_v62 = vsel %vm1773_vm7, %v2432_v56, %v1760_v59 }
 0xa66   :  { %v521_v14 = vpop.permute.xlu1 %520 }
 0xa67   :  { %v524_v15 = vsel %vm296_vm5, %v523_v13, %v521_v14 }
 0xa68   :  { %1939 = vmatmul.mubr.msk.f32.vlgmr.msra.gmra.mxu1 %vm61_vm6, %v524_v15 }
 0xa69   :  { %2021 = vmatpush3.msra.mxu1 %v2390_v36  ;;  %2022 = vmatprep.mubr.msk.f32.mxu1 %vm2284_vm1, %v2279_v0 }
 0xa6a   :  { %1953 = vmatprep.subr.msk.mxu1 %vm65_vm0, %v2335_v1 }
 0xb28   :  { %v594_v16 = vpop.f32.mrf.mxu1 }
 0xb29   :  { %v601_v33 = vadd.f32 %v1940_v29, %v594_v16 }
 0xb2a   :  { %v596_v18 = vpop.f32.mrf.mxu1 }
 0xb2b   :  { %v604_v19 = vadd.f32 %v1941_v17, %v596_v18  ;;  %v1942_v35 = vmul.f32 -1.442695, %v601_v33 }
 0xb2d   :  { %2104 = vtanh.f32 %v604_v19  ;;  %v1943_v21 = vmul.f32 -1.442695, %v604_v19 }
 0xb2f   :  { %2106 = vpow2.f32 %v1943_v21 }
 0xb3a   :  { %v2105_v20 = vpop.eup %2104 }
 0xb3b   :  { %638 = vrot.lane.b32.xlu0 %v2105_v20, %s2280_s9 }
 0xb3c   :  { %v2107_v22 = vpop.eup %2106 }
 0xb3d   :  { %v632_v23 = vadd.f32 1.0, %v2107_v22  ;;  %v1949_v22 = vld [vmem:[%s2813_s1 + $0x6] sm:$0x3] }
 0xb3f   :  { %2108 = vrcp.f32 %v632_v23 }
 0xb4c   :  { %v2109_v24 = vpop.eup %2108 }
 0xb4d   :  { %v636_v27 = vmul.f32 %v2109_v24, %v2464_v28 }
 0xbad   :  { %v639_v25 = vpop.permute.xlu0 %638 }
 0xbae   :  { %v641_v26 = vmul.f32 %v2109_v24, %v639_v25 }
 0xbb0   :  { %643 = vrot.lane.b32.xlu1 %v641_v26, %s2281_s12 }
 0xc22   :  { %v644_v30 = vpop.permute.xlu1 %643 }
 0xc23   :  { %v2508_v31 = vadd.f32 %v644_v30, %v636_v27 }
 0xc25   :  { %2110 = vtanh.f32 %v2508_v31 }
 0xc26   :  { %2112 = vtanh.f32 %v601_v33 }
 0xc27   :  { %2114 = vpow2.f32 %v1942_v35  ;;  %v1948_v35 = vld [vmem:[%s2812_s0 + $0x6] sm:$0x3] }
 0xc32   :  { %v2111_v32 = vpop.eup %2110 }
 0xc33   :  { %649 = vrot.lane.b32.xlu0 %v2111_v32, %s2278_s28  ;;  %v2113_v34 = vpop.eup %2112 }
 0xc34   :  { %v2115_v28 = vpop.eup %2114 }
 0xc35   :  { %v608_v37 = vadd.f32 1.0, %v2115_v28 }
 0xc37   :  { %614 = vrot.lane.b32.xlu0 %v2113_v34, %s2282_s13  ;;  %2116 = vrcp.f32 %v608_v37 }
 0xc44   :  { %v2117_v40 = vpop.eup %2116 }
 0xc45   :  { %v612_v48 = vmul.f32 %v2117_v40, %v2479_v49 }
 0xca5   :  { %v650_v38 = vpop.permute.xlu0 %649 }
 0xca6   :  { %v652_v39 = vmul.f32 %v2109_v24, %v650_v38 }
 0xca8   :  { %654 = vrot.lane.b32.xlu1 %v652_v39, %s2285_s3 }
 0xca9   :  { %v615_v42 = vpop.permute.xlu0 %614 }
 0xcaa   :  { %v617_v43 = vmul.f32 %v2117_v40, %v615_v42 }
 0xcac   :  { %619 = vrot.lane.b32.xlu0 %v617_v43, %s2283_s16 }
 0xd1a   :  { %v655_v44 = vpop.permute.xlu1 %654 }
 0xd1b   :  { %2018 = vmatmul.mubr.msk.f32.vlgmr.msra.gmra.mxu0 %vm198_vm2, %v655_v44 }
 0xd1c   :  { %1946 = vmatpush1.msk.msra.mxu0 %vm65_vm0, %v2337_v2  ;;  %819 = vmatprep.mubr.f32.mxu0 %v2279_v0 }
 0xd1d   :  { %777 = vmatprep.subr.mxu0 %v2339_v3 }
 0xd1e   :  { %778 = vmatpush1.msra.mxu0 %v2343_v4  ;;  %v620_v45 = vpop.permute.xlu0 %619 }
 0xd1f   :  { %779 = vmatprep.subr.mxu0 %v2347_v5  ;;  %v2532_v52 = vadd.f32 %v620_v45, %v612_v48 }
 0xd20   :  { %780 = vmatpush1.msra.mxu0 %v2350_v6 }
 0xd21   :  { %781 = vmatprep.subr.mxu0 %v2353_v7  ;;  %2118 = vtanh.f32 %v2532_v52 }
 0xd22   :  { %782 = vmatpush1.msra.mxu0 %v2356_v8 }
 0xd23   :  { %783 = vmatprep.subr.mxu0 %v2359_v9 }
 0xd24   :  { %784 = vmatpush1.msra.mxu0 %v2362_v10 }
 0xd25   :  { %785 = vmatprep.subr.mxu0 %v2365_v11 }
 0xd26   :  { %786 = vmatpush1.msra.mxu0 %v2368_v12 }
 0xd27   :  { %2025 = vmatprep.subr.mxu0 %v2279_v0 }
 0xd2e   :  { %v2119_v54 = vpop.eup %2118 }
 0xddb   :  { %v724_v46 = vpop.f32.mrf.mxu0 }
 0xddc   :  { %v725_v50 = vadd.f32 %v2423_v41, %v724_v46 }
 0xddd   :  { %v2019_v51 = vpop.f32.mrf.mxu0 }
 0xdde   :  { %v728_v53 = vsel %vm271_vm3, %v725_v50, -inf }
 0xddf   :  { %729 = vmax.xlane.f32.xlu1 %v728_v53 }
 0xdf0   :  { %625 = vrot.lane.b32.xlu1 %v2119_v54, %s2282_s13 }
 0xe68   :  { %v730_v55 = vpop.xlane.xlu1 %729 }
 0xe69   :  { %v731_v47 = vsub.f32 %v725_v50, %v730_v55 }
 0xe6b   :  { %v732_v57 = vmul.f32 1.442695, %v731_v47 }
 0xe6c   :  { %v626_v60 = vpop.permute.xlu1 %625 }
 0xe6d   :  { %2120 = vpow2.f32 %v732_v57  ;;  %v628_v49 = vmul.f32 %v2117_v40, %v626_v60 }
 0xe6f   :  { %v1762_v61 = vrot.slane %v628_v49, 4 }
 0xe71   :  { %v2541_v63 = vsel %vm65_vm0, %v1774_v62, %v1762_v61 }
 0xe7a   :  { %v2121_v13 = vpop.eup %2120 }
 0xe7b   :  { %v734_v14 = vsel %vm271_vm3, %v2121_v13, 0.0 }
 0xe7c   :  { %735 = vadd.xlane.f32.xlu0 %v734_v14 }
 0xe92   :  { %740 = vrot.lane.b32.xlu0 %v628_v49, %s2283_s16 }
 0xf05   :  { %v736_v15 = vpop.xlane.xlu0 %735 }
 0xf06   :  { %2122 = vrcp.f32 %v736_v15 }
 0xf09   :  { %v741_v18 = vpop.permute.xlu0 %740 }
 0xf13   :  { %v2123_v58 = vpop.eup %2122 }
 0xf14   :  { %v738_v16 = vmul.f32 %v2123_v58, %v2121_v13 }
 0xf16   :  { %744 = vrot.lane.b32.xlu1 %v738_v16, %s2283_s16 }
 0xf1a   :  { %747 = vrot.lane.b32.xlu1 %v652_v39, %s2286_s19 }
 0xf88   :  { %v745_v17 = vpop.permute.xlu1 %744 }
 0xf89   :  { %v750_v56 = vsel %vm294_vm4, %v741_v18, %v745_v17 }
 0xf8c   :  { %v748_v19 = vpop.permute.xlu1 %747 }
 0xf8d   :  { %v751_v20 = vsel %vm296_vm5, %v750_v56, %v748_v19 }
 0xf8e   :  { %1947 = vmatmul.mubr.msk.f32.vlgmr.msra.gmra.mxu0 %vm61_vm6, %v751_v20 }
 0xf8f   :  { %2026 = vmatpush3.msra.mxu0 %v2390_v36  ;;  %2027 = vmatprep.mubr.msk.f32.mxu0 %vm2284_vm1, %v2279_v0 }
 0xf90   :  { %1961 = vmatprep.subr.msk.mxu0 %vm65_vm0, %v2335_v1 }
0x104e   :  { %v821_v21 = vpop.f32.mrf.mxu0 }
0x104f   :  { %v828_v38 = vadd.f32 %v1948_v35, %v821_v21 }
0x1050   :  { %v823_v23 = vpop.f32.mrf.mxu0 }
0x1051   :  { %v831_v24 = vadd.f32 %v1949_v22, %v823_v23  ;;  %v1950_v42 = vmul.f32 -1.442695, %v828_v38 }
0x1053   :  { %2124 = vtanh.f32 %v831_v24  ;;  %v1951_v26 = vmul.f32 -1.442695, %v831_v24 }
0x1055   :  { %2126 = vpow2.f32 %v1951_v26 }
0x1060   :  { %v2125_v25 = vpop.eup %2124 }
0x1061   :  { %865 = vrot.lane.b32.xlu0 %v2125_v25, %s2280_s9  ;;  %v1957_v25 = vld [vmem:[%s2813_s1 + $0x8] sm:$0x3] }
0x1062   :  { %v2127_v27 = vpop.eup %2126 }
0x1063   :  { %v859_v29 = vadd.f32 1.0, %v2127_v27 }
0x1065   :  { %2128 = vrcp.f32 %v859_v29 }
0x1072   :  { %v2129_v30 = vpop.eup %2128 }
0x1073   :  { %v863_v34 = vmul.f32 %v2129_v30, %v2508_v31 }
0x10d3   :  { %v866_v33 = vpop.permute.xlu0 %865 }
0x10d4   :  { %v868_v32 = vmul.f32 %v2129_v30, %v866_v33 }
0x10d6   :  { %870 = vrot.lane.b32.xlu1 %v868_v32, %s2281_s12 }
0x1148   :  { %v871_v28 = vpop.permute.xlu1 %870 }
0x1149   :  { %v2564_v37 = vadd.f32 %v871_v28, %v863_v34 }
0x114b   :  { %2130 = vtanh.f32 %v2564_v37 }
0x114c   :  { %2132 = vtanh.f32 %v828_v38 }
0x114d   :  { %2134 = vpow2.f32 %v1950_v42 }
0x1158   :  { %v2131_v39 = vpop.eup %2130 }
0x1159   :  { %876 = vrot.lane.b32.xlu0 %v2131_v39, %s2278_s28  ;;  %v2133_v40 = vpop.eup %2132  ;;  %v1956_v39 = vld [vmem:[%s2812_s0 + $0x8] sm:$0x3] }
0x115a   :  { %v2135_v31 = vpop.eup %2134 }
0x115b   :  { %v835_v43 = vadd.f32 1.0, %v2135_v31 }
0x115d   :  { %841 = vrot.lane.b32.xlu0 %v2133_v40, %s2282_s13  ;;  %2136 = vrcp.f32 %v835_v43 }
0x116a   :  { %v2137_v46 = vpop.eup %2136 }
0x116b   :  { %v839_v55 = vmul.f32 %v2137_v46, %v2532_v52 }
0x11cb   :  { %v877_v44 = vpop.permute.xlu0 %876 }
0x11cc   :  { %v879_v45 = vmul.f32 %v2129_v30, %v877_v44 }
0x11ce   :  { %881 = vrot.lane.b32.xlu1 %v879_v45, %s2285_s3 }
0x11cf   :  { %v842_v48 = vpop.permute.xlu0 %841 }
0x11d0   :  { %v844_v50 = vmul.f32 %v2137_v46, %v842_v48 }
0x11d2   :  { %846 = vrot.lane.b32.xlu0 %v844_v50, %s2283_s16 }
0x1240   :  { %v882_v51 = vpop.permute.xlu1 %881 }
0x1241   :  { %2023 = vmatmul.mubr.msk.f32.vlgmr.msra.gmra.mxu1 %vm198_vm2, %v882_v51 }
0x1242   :  { %1954 = vmatpush1.msk.msra.mxu1 %vm65_vm0, %v2337_v2  ;;  %1046 = vmatprep.mubr.f32.mxu1 %v2279_v0 }
0x1243   :  { %1004 = vmatprep.subr.mxu1 %v2339_v3 }
0x1244   :  { %1005 = vmatpush1.msra.mxu1 %v2343_v4  ;;  %v847_v53 = vpop.permute.xlu0 %846 }
0x1245   :  { %1006 = vmatprep.subr.mxu1 %v2347_v5  ;;  %v2588_v59 = vadd.f32 %v847_v53, %v839_v55 }
0x1246   :  { %1007 = vmatpush1.msra.mxu1 %v2350_v6 }
0x1247   :  { %1008 = vmatprep.subr.mxu1 %v2353_v7  ;;  %2138 = vtanh.f32 %v2588_v59 }
0x1248   :  { %1009 = vmatpush1.msra.mxu1 %v2356_v8 }
0x1249   :  { %1010 = vmatprep.subr.mxu1 %v2359_v9 }
0x124a   :  { %1011 = vmatpush1.msra.mxu1 %v2362_v10 }
0x124b   :  { %1012 = vmatprep.subr.mxu1 %v2365_v11 }
0x124c   :  { %1013 = vmatpush1.msra.mxu1 %v2368_v12 }
0x124d   :  { %2030 = vmatprep.subr.mxu1 %v2279_v0 }
0x1254   :  { %v2139_v49 = vpop.eup %2138 }
0x1301   :  { %v951_v54 = vpop.f32.mrf.mxu1 }
0x1302   :  { %v952_v47 = vadd.f32 %v2423_v41, %v951_v54 }
0x1303   :  { %v2024_v57 = vpop.f32.mrf.mxu1 }
0x1304   :  { %v955_v60 = vsel %vm271_vm3, %v952_v47, -inf }
0x1305   :  { %956 = vmax.xlane.f32.xlu1 %v955_v60 }
0x1316   :  { %852 = vrot.lane.b32.xlu1 %v2139_v49, %s2282_s13 }
0x138e   :  { %v957_v61 = vpop.xlane.xlu1 %956 }
0x138f   :  { %v958_v62 = vsub.f32 %v952_v47, %v957_v61 }
0x1391   :  { %v959_v13 = vmul.f32 1.442695, %v958_v62 }
0x1392   :  { %v853_v14 = vpop.permute.xlu1 %852 }
0x1393   :  { %2140 = vpow2.f32 %v959_v13  ;;  %v855_v15 = vmul.f32 %v2137_v46, %v853_v14 }
0x1395   :  { %v1764_v52 = vrot.slane %v855_v15, 2 }
0x1397   :  { %v2595_v58 = vsel %vm1776_vm8, %v2541_v63, %v1764_v52 }
0x13a0   :  { %v2141_v16 = vpop.eup %2140 }
0x13a1   :  { %v961_v17 = vsel %vm271_vm3, %v2141_v16, 0.0 }
0x13a2   :  { %962 = vadd.xlane.f32.xlu0 %v961_v17 }
0x13b8   :  { %967 = vrot.lane.b32.xlu0 %v855_v15, %s2283_s16 }
0x142b   :  { %v963_v18 = vpop.xlane.xlu0 %962 }
0x142c   :  { %2142 = vrcp.f32 %v963_v18  ;;  %v1965_v18 = vld [vmem:[%s2813_s1 + $0xa] sm:$0x3] }
0x142f   :  { %v968_v21 = vpop.permute.xlu0 %967 }
0x1439   :  { %v2143_v56 = vpop.eup %2142 }
0x143a   :  { %v965_v19 = vmul.f32 %v2143_v56, %v2141_v16 }
0x143c   :  { %971 = vrot.lane.b32.xlu1 %v965_v19, %s2283_s16 }
0x1440   :  { %974 = vrot.lane.b32.xlu1 %v879_v45, %s2286_s19 }
0x14ae   :  { %v972_v20 = vpop.permute.xlu1 %971 }
0x14af   :  { %v977_v22 = vsel %vm294_vm4, %v968_v21, %v972_v20 }
0x14b2   :  { %v975_v63 = vpop.permute.xlu1 %974 }
0x14b3   :  { %v978_v23 = vsel %vm296_vm5, %v977_v22, %v975_v63 }
0x14b4   :  { %1955 = vmatmul.mubr.msk.f32.vlgmr.msra.gmra.mxu1 %vm61_vm6, %v978_v23 }
0x14b5   :  { %2031 = vmatpush3.msra.mxu1 %v2390_v36  ;;  %2032 = vmatprep.mubr.msk.f32.mxu1 %vm2284_vm1, %v2279_v0 }
0x14b6   :  { %1969 = vmatprep.subr.msk.mxu1 %vm65_vm0, %v2335_v1 }
0x1574   :  { %v1048_v24 = vpop.f32.mrf.mxu1 }
0x1575   :  { %v1055_v31 = vadd.f32 %v1956_v39, %v1048_v24 }
0x1576   :  { %v1050_v26 = vpop.f32.mrf.mxu1 }
0x1577   :  { %v1058_v27 = vadd.f32 %v1957_v25, %v1050_v26  ;;  %v1958_v45 = vmul.f32 -1.442695, %v1055_v31  ;;  %v1964_v25 = vld [vmem:[%s2812_s0 + $0xa] sm:$0x3] }
0x1579   :  { %2144 = vtanh.f32 %v1058_v27  ;;  %v1959_v30 = vmul.f32 -1.442695, %v1058_v27 }
0x157b   :  { %2146 = vpow2.f32 %v1959_v30 }
0x1586   :  { %v2145_v29 = vpop.eup %2144 }
0x1587   :  { %1092 = vrot.lane.b32.xlu0 %v2145_v29, %s2280_s9 }
0x1588   :  { %v2147_v33 = vpop.eup %2146 }
0x1589   :  { %v1086_v32 = vadd.f32 1.0, %v2147_v33 }
0x158b   :  { %2148 = vrcp.f32 %v1086_v32 }
0x1598   :  { %v2149_v34 = vpop.eup %2148 }
0x1599   :  { %v1090_v38 = vmul.f32 %v2149_v34, %v2564_v37 }
0x15f9   :  { %v1093_v35 = vpop.permute.xlu0 %1092 }
0x15fa   :  { %v1095_v28 = vmul.f32 %v2149_v34, %v1093_v35 }
0x15fc   :  { %1097 = vrot.lane.b32.xlu1 %v1095_v28, %s2281_s12 }
0x166e   :  { %v1098_v40 = vpop.permute.xlu1 %1097 }
0x166f   :  { %v2618_v42 = vadd.f32 %v1098_v40, %v1090_v38 }
0x1671   :  { %2150 = vtanh.f32 %v2618_v42 }
0x1672   :  { %2152 = vtanh.f32 %v1055_v31 }
0x1673   :  { %2154 = vpow2.f32 %v1958_v45  ;;  %v2687_v45 = vld [vmem:[#allocation2 + $0x40] sm:$0xff] }
0x167e   :  { %v2151_v43 = vpop.eup %2150 }
0x167f   :  { %1103 = vrot.lane.b32.xlu0 %v2151_v43, %s2278_s28  ;;  %v2153_v44 = vpop.eup %2152  ;;  %v2679_v43 = vld [vmem:[#allocation2 + $0x50] sm:$0xf] }
0x1680   :  { %v2155_v37 = vpop.eup %2154 }
0x1681   :  { %v1062_v46 = vadd.f32 1.0, %v2155_v37  ;;  %v2690_v37 = vld [vmem:[#allocation2 + $0x38] sm:$0xff] }
0x1683   :  { %1068 = vrot.lane.b32.xlu0 %v2153_v44, %s2282_s13  ;;  %2156 = vrcp.f32 %v1062_v46  ;;  %v2684_v44 = vld [vmem:[#allocation2 + $0x48] sm:$0xff]  ;;  %v2693_v46 = vld [vmem:[#allocation2 + $0x30] sm:$0xff] }
0x1690   :  { %v2157_v51 = vpop.eup %2156 }
0x16f1   :  { %v1104_v48 = vpop.permute.xlu0 %1103 }
0x16f2   :  { %v1106_v50 = vmul.f32 %v2149_v34, %v1104_v48  ;;  %v2696_v48 = vld [vmem:[#allocation2 + $0x28] sm:$0xff] }
0x16f4   :  { %1108 = vrot.lane.b32.xlu1 %v1106_v50, %s2285_s3 }
0x16f5   :  { %v1069_v53 = vpop.permute.xlu0 %1068 }
0x16f6   :  { %v1071_v54 = vmul.f32 %v2157_v51, %v1069_v53  ;;  %v2705_v53 = vld [vmem:[#allocation2 + $0x10] sm:$0xff] }
0x16f8   :  { %1073 = vrot.lane.b32.xlu0 %v1071_v54, %s2283_s16  ;;  %v2708_v54 = vld [vmem:[#allocation2 + $0x8] sm:$0xff] }
0x1766   :  { %v1109_v55 = vpop.permute.xlu1 %1108 }
0x1767   :  { %2028 = vmatmul.mubr.msk.f32.vlgmr.msra.gmra.mxu0 %vm198_vm2, %v1109_v55  ;;  %v2711_v55 = vld [vmem:[#allocation2] sm:$0xff] }
0x1768   :  { %1962 = vmatpush1.msk.msra.mxu0 %vm65_vm0, %v2337_v2  ;;  %1273 = vmatprep.mubr.f32.mxu0 %v2279_v0 }
0x1769   :  { %1231 = vmatprep.subr.mxu0 %v2339_v3 }
0x176a   :  { %1232 = vmatpush1.msra.mxu0 %v2343_v4  ;;  %v1074_v2 = vpop.permute.xlu0 %1073  ;;  %v1066_v4 = vmul.f32 %v2157_v51, %v2588_v59 }
0x176b   :  { %1233 = vmatprep.subr.mxu0 %v2347_v5 }
0x176c   :  { %1234 = vmatpush1.msra.mxu0 %v2350_v6 }
0x176d   :  { %1235 = vmatprep.subr.mxu0 %v2353_v7  ;;  %v2642_v7 = vadd.f32 %v1074_v2, %v1066_v4 }
0x176e   :  { %1236 = vmatpush1.msra.mxu0 %v2356_v8 }
0x176f   :  { %1237 = vmatprep.subr.mxu0 %v2359_v9  ;;  %2158 = vtanh.f32 %v2642_v7 }
0x1770   :  { %1238 = vmatpush1.msra.mxu0 %v2362_v10 }
0x1771   :  { %1239 = vmatprep.subr.mxu0 %v2365_v11 }
0x1772   :  { %1240 = vmatpush1.msra.mxu0 %v2368_v12 }
0x1773   :  { %2035 = vmatprep.subr.mxu0 %v2279_v0 }
0x177c   :  { %v2159_v9 = vpop.eup %2158 }
0x1827   :  { %v1178_v3 = vpop.f32.mrf.mxu0 }
0x1828   :  { %v1179_v5 = vadd.f32 %v2423_v41, %v1178_v3 }
0x1829   :  { %v2029_v6 = vpop.f32.mrf.mxu0 }
0x182a   :  { %v1182_v8 = vsel %vm271_vm3, %v1179_v5, -inf }
0x182b   :  { %1183 = vmax.xlane.f32.xlu1 %v1182_v8 }
0x183c   :  { %1079 = vrot.lane.b32.xlu1 %v2159_v9, %s2282_s13 }
0x18b4   :  { %v1184_v10 = vpop.xlane.xlu1 %1183 }
0x18b5   :  { %v1185_v11 = vsub.f32 %v1179_v5, %v1184_v10 }
0x18b7   :  { %v1186_v12 = vmul.f32 1.442695, %v1185_v11 }
0x18b8   :  { %v1080_v59 = vpop.permute.xlu1 %1079 }
0x18b9   :  { %2160 = vpow2.f32 %v1186_v12  ;;  %v2648_v60 = vmul.f32 %v2157_v51, %v1080_v59  ;;  %v2702_v51 = vld [vmem:[#allocation2 + $0x18] sm:$0xff] }
0x18c6   :  { %v2161_v47 = vpop.eup %2160 }
0x18c7   :  { %v1188_v57 = vsel %vm271_vm3, %v2161_v47, 0.0 }
0x18c8   :  { %1189 = vadd.xlane.f32.xlu0 %v1188_v57 }
0x18de   :  { %1194 = vrot.lane.b32.xlu0 %v2648_v60, %s2283_s16 }
0x1951   :  { %v1190_v49 = vpop.xlane.xlu0 %1189 }
0x1952   :  { %2162 = vrcp.f32 %v1190_v49 }
0x1955   :  { %v1195_v14 = vpop.permute.xlu0 %1194 }
0x195f   :  { %v2163_v61 = vpop.eup %2162 }
0x1960   :  { %v1192_v62 = vmul.f32 %v2163_v61, %v2161_v47 }
0x1962   :  { %1198 = vrot.lane.b32.xlu1 %v1192_v62, %s2283_s16 }
0x1966   :  { %1201 = vrot.lane.b32.xlu1 %v1106_v50, %s2286_s19  ;;  %v2699_v50 = vld [vmem:[#allocation2 + $0x20] sm:$0xff] }
0x19d4   :  { %v1199_v13 = vpop.permute.xlu1 %1198 }
0x19d5   :  { %v1204_v15 = vsel %vm294_vm4, %v1195_v14, %v1199_v13 }
0x19d8   :  { %v1202_v52 = vpop.permute.xlu1 %1201 }
0x19d9   :  { %v1205_v16 = vsel %vm296_vm5, %v1204_v15, %v1202_v52 }
0x19da   :  { %1963 = vmatmul.mubr.msk.f32.vlgmr.msra.gmra.mxu0 %vm61_vm6, %v1205_v16 }
0x19db   :  { %2036 = vmatpush3.msra.mxu0 %v2390_v36  ;;  %2037 = vmatprep.mubr.msk.f32.mxu0 %vm2284_vm1, %v2279_v0 }
0x19dc   :  { %1977 = vmatprep.subr.msk.mxu0 %vm65_vm0, %v2335_v1 }
0x1a9a   :  { %v1275_v17 = vpop.f32.mrf.mxu0 }
0x1a9b   :  { %v1282_v29 = vadd.f32 %v1964_v25, %v1275_v17  ;;  %v1972_v25 = vld [vmem:[%s2812_s0 + $0xc] sm:$0x3] }
0x1a9c   :  { %v1277_v56 = vpop.f32.mrf.mxu0 }
0x1a9d   :  { %v1285_v19 = vadd.f32 %v1965_v18, %v1277_v56  ;;  %v1966_v32 = vmul.f32 -1.442695, %v1282_v29  ;;  %v1973_v18 = vld [vmem:[%s2813_s1 + $0xc] sm:$0x3] }
0x1a9f   :  { %2164 = vtanh.f32 %v1285_v19  ;;  %v1967_v21 = vmul.f32 -1.442695, %v1285_v19 }
0x1aa1   :  { %2166 = vpow2.f32 %v1967_v21 }
0x1aac   :  { %v2165_v20 = vpop.eup %2164 }
0x1aad   :  { %1319 = vrot.lane.b32.xlu0 %v2165_v20, %s2280_s9 }
0x1aae   :  { %v2167_v36 = vpop.eup %2166 }
0x1aaf   :  { %v1313_v22 = vadd.f32 1.0, %v2167_v36 }
0x1ab1   :  { %2168 = vrcp.f32 %v1313_v22 }
0x1abe   :  { %v2169_v63 = vpop.eup %2168 }
0x1abf   :  { %v1317_v1 = vmul.f32 %v2169_v63, %v2618_v42 }
0x1b1f   :  { %v1320_v23 = vpop.permute.xlu0 %1319 }
0x1b20   :  { %v1322_v24 = vmul.f32 %v2169_v63, %v1320_v23 }
0x1b22   :  { %1324 = vrot.lane.b32.xlu1 %v1322_v24, %s2281_s12 }
0x1b94   :  { %v1325_v26 = vpop.permute.xlu1 %1324 }
0x1b95   :  { %v2671_v27 = vadd.f32 %v1325_v26, %v1317_v1 }
0x1b97   :  { %2170 = vtanh.f32 %v2671_v27 }
0x1b98   :  { %2172 = vtanh.f32 %v1282_v29 }
0x1b99   :  { %2174 = vpow2.f32 %v1966_v32 }
0x1ba4   :  { %v2171_v30 = vpop.eup %2170 }
0x1ba5   :  { %1330 = vrot.lane.b32.xlu0 %v2171_v30, %s2278_s28  ;;  %v2173_v33 = vpop.eup %2172 }
0x1ba6   :  { %v2175_v34 = vpop.eup %2174 }
0x1ba7   :  { %v1289_v35 = vadd.f32 1.0, %v2175_v34 }
0x1ba9   :  { %1295 = vrot.lane.b32.xlu0 %v2173_v33, %s2282_s13  ;;  %2176 = vrcp.f32 %v1289_v35 }
0x1bb6   :  { %v2177_v39 = vpop.eup %2176 }
0x1bb7   :  { %v1293_v4 = vmul.f32 %v2177_v39, %v2642_v7 }
0x1c17   :  { %v1331_v28 = vpop.permute.xlu0 %1330 }
0x1c18   :  { %v1333_v38 = vmul.f32 %v2169_v63, %v1331_v28 }
0x1c1a   :  { %1335 = vrot.lane.b32.xlu1 %v1333_v38, %s2285_s3 }
0x1c1b   :  { %v1296_v40 = vpop.permute.xlu0 %1295 }
0x1c1c   :  { %v1298_v42 = vmul.f32 %v2177_v39, %v1296_v40 }
0x1c1e   :  { %1300 = vrot.lane.b32.xlu0 %v1298_v42, %s2283_s16 }
0x1c8c   :  { %v1336_v31 = vpop.permute.xlu1 %1335 }
0x1c8d   :  { %2033 = vmatmul.mubr.msk.f32.vlgmr.msra.gmra.mxu1 %vm198_vm2, %v1336_v31 }
0x1c8e   :  { %1970 = vmatpush1.msk.msra.mxu1 %vm65_vm0, %v2679_v43  ;;  %1500 = vmatprep.mubr.f32.mxu1 %v2279_v0 }
0x1c8f   :  { %1458 = vmatprep.subr.mxu1 %v2684_v44 }
0x1c90   :  { %1459 = vmatpush1.msra.mxu1 %v2687_v45  ;;  %v1301_v2 = vpop.permute.xlu0 %1300 }
0x1c91   :  { %1460 = vmatprep.subr.mxu1 %v2690_v37  ;;  %v2716_v8 = vadd.f32 %v1301_v2, %v1293_v4 }
0x1c92   :  { %1461 = vmatpush1.msra.mxu1 %v2693_v46 }
0x1c93   :  { %1462 = vmatprep.subr.mxu1 %v2696_v48  ;;  %2178 = vtanh.f32 %v2716_v8 }
0x1c94   :  { %1463 = vmatpush1.msra.mxu1 %v2699_v50 }
0x1c95   :  { %1464 = vmatprep.subr.mxu1 %v2702_v51 }
0x1c96   :  { %1465 = vmatpush1.msra.mxu1 %v2705_v53 }
0x1c97   :  { %1466 = vmatprep.subr.mxu1 %v2708_v54 }
0x1c98   :  { %1467 = vmatpush1.msra.mxu1 %v2711_v55 }
0x1ca0   :  { %v2179_v10 = vpop.eup %2178 }
0x1d4d   :  { %v1405_v3 = vpop.f32.mrf.mxu1 }
0x1d4e   :  { %v1406_v5 = vadd.f32 %v2423_v41, %v1405_v3 }
0x1d4f   :  { %v2034_v6 = vpop.f32.mrf.mxu1 }
0x1d50   :  { %v1409_v9 = vsel %vm271_vm3, %v1406_v5, -inf }
0x1d51   :  { %1410 = vmax.xlane.f32.xlu1 %v1409_v9 }
0x1d62   :  { %1306 = vrot.lane.b32.xlu1 %v2179_v10, %s2282_s13 }
0x1dda   :  { %v1411_v11 = vpop.xlane.xlu1 %1410 }
0x1ddb   :  { %v1412_v12 = vsub.f32 %v1406_v5, %v1411_v11 }
0x1ddd   :  { %v1413_v47 = vmul.f32 1.442695, %v1412_v12 }
0x1dde   :  { %v1307_v41 = vpop.permute.xlu1 %1306 }
0x1ddf   :  { %2180 = vpow2.f32 %v1413_v47  ;;  %v2722_v59 = vmul.f32 %v2177_v39, %v1307_v41 }
0x1de1   :  { %v1766_v2 = vrot.slane %v2722_v59, 6 }
0x1de3   :  { %v1778_v6 = vsel %vm1773_vm7, %v2648_v60, %v1766_v2 }
0x1dec   :  { %v2181_v57 = vpop.eup %2180 }
0x1ded   :  { %v1415_v7 = vsel %vm271_vm3, %v2181_v57, 0.0 }
0x1dee   :  { %1416 = vadd.xlane.f32.xlu0 %v1415_v7 }
0x1e04   :  { %1421 = vrot.lane.b32.xlu0 %v2722_v59, %s2283_s16 }
0x1e77   :  { %v1417_v49 = vpop.xlane.xlu0 %1416 }
0x1e78   :  { %2182 = vrcp.f32 %v1417_v49  ;;  %v1980_v49 = vld [vmem:[%s2812_s0 + $0xe] sm:$0x3] }
0x1e7b   :  { %v1422_v14 = vpop.permute.xlu0 %1421 }
0x1e85   :  { %v2183_v61 = vpop.eup %2182 }
0x1e86   :  { %v1419_v62 = vmul.f32 %v2183_v61, %v2181_v57 }
0x1e88   :  { %1425 = vrot.lane.b32.xlu1 %v1419_v62, %s2283_s16 }
0x1e8c   :  { %1428 = vrot.lane.b32.xlu1 %v1333_v38, %s2286_s19 }
0x1efa   :  { %v1426_v13 = vpop.permute.xlu1 %1425 }
0x1efb   :  { %v1431_v15 = vsel %vm294_vm4, %v1422_v14, %v1426_v13 }
0x1efe   :  { %v1429_v52 = vpop.permute.xlu1 %1428 }
0x1eff   :  { %v1432_v16 = vsel %vm296_vm5, %v1431_v15, %v1429_v52 }
0x1f00   :  { %1971 = vmatmul.mubr.msk.f32.vlgmr.msra.gmra.mxu1 %vm61_vm6, %v1432_v16 }
0x1fc0   :  { %v1502_v17 = vpop.f32.mrf.mxu1 }
0x1fc1   :  { %v1509_v30 = vadd.f32 %v1972_v25, %v1502_v17 }
0x1fc2   :  { %v1504_v56 = vpop.f32.mrf.mxu1 }
0x1fc3   :  { %v1512_v19 = vadd.f32 %v1973_v18, %v1504_v56  ;;  %v1974_v34 = vmul.f32 -1.442695, %v1509_v30 }
0x1fc5   :  { %2184 = vtanh.f32 %v1512_v19  ;;  %v1975_v21 = vmul.f32 -1.442695, %v1512_v19 }
0x1fc7   :  { %2186 = vpow2.f32 %v1975_v21 }
0x1fd2   :  { %v2185_v20 = vpop.eup %2184 }
0x1fd3   :  { %1546 = vrot.lane.b32.xlu0 %v2185_v20, %s2280_s9 }
0x1fd4   :  { %v2187_v36 = vpop.eup %2186 }
0x1fd5   :  { %v1540_v22 = vadd.f32 1.0, %v2187_v36 }
0x1fd7   :  { %2188 = vrcp.f32 %v1540_v22  ;;  %v1784_v22 = vld [vmem:[%s2817_s5 + $0x18] sm:$0xff] }
0x1fd8   :  { %2040 = vmatprep.subr.mxu1 %v1784_v22 }
0x1fd9   :  { %2041 = vmatpush3.msra.mxu1 %v1784_v22 }
0x1fe4   :  { %v2189_v63 = vpop.eup %2188 }
0x1fe5   :  { %v1544_v1 = vmul.f32 %v2189_v63, %v2671_v27 }
0x2045   :  { %v1547_v23 = vpop.permute.xlu0 %1546 }
0x2046   :  { %v1549_v24 = vmul.f32 %v2189_v63, %v1547_v23  ;;  %v1781_v23 = vld [vmem:[%s2817_s5] sm:$0xff] }
0x2048   :  { %1551 = vrot.lane.b32.xlu1 %v1549_v24, %s2281_s12 }
0x20ba   :  { %v1552_v26 = vpop.permute.xlu1 %1551 }
0x20bb   :  { %v1554_v29 = vadd.f32 %v1552_v26, %v1544_v1 }
0x20bd   :  { %2190 = vtanh.f32 %v1554_v29 }
0x20be   :  { %2192 = vtanh.f32 %v1509_v30 }
0x20bf   :  { %2194 = vpow2.f32 %v1974_v34 }
0x20ca   :  { %v2191_v33 = vpop.eup %2190 }
0x20cb   :  { %1557 = vrot.lane.b32.xlu0 %v2191_v33, %s2278_s28  ;;  %v2193_v32 = vpop.eup %2192  ;;  %v1982_v33 = vld [vmem:[%s2818_s6] ss:$0 sm:$0xff] }
0x20cc   :  { %v2195_v35 = vpop.eup %2194 }
0x20cd   :  { %v1516_v28 = vadd.f32 1.0, %v2195_v35 }
0x20cf   :  { %1522 = vrot.lane.b32.xlu0 %v2193_v32, %s2282_s13  ;;  %2196 = vrcp.f32 %v1516_v28 }
0x20dc   :  { %v2197_v39 = vpop.eup %2196 }
0x213d   :  { %v1558_v27 = vpop.permute.xlu0 %1557 }
0x213e   :  { %v1560_v38 = vmul.f32 %v2189_v63, %v1558_v27  ;;  %v1783_v63 = vld [vmem:[%s2817_s5 + $0x10] sm:$0xff] }
0x213f   :  { %2042 = vmatprep.subr.mxu1 %v1783_v63 }
0x2140   :  { %1562 = vrot.lane.b32.xlu1 %v1560_v38, %s2285_s3  ;;  %2043 = vmatpush3.msra.mxu1 %v1783_v63 }
0x2141   :  { %v1523_v40 = vpop.permute.xlu0 %1522 }
0x2142   :  { %v1525_v42 = vmul.f32 %v2197_v39, %v1523_v40 }
0x2144   :  { %1527 = vrot.lane.b32.xlu0 %v1525_v42, %s2283_s16 }
0x21b2   :  { %v1563_v31 = vpop.permute.xlu1 %1562 }
0x21b3   :  { %2038 = vmatmul.mubr.msk.f32.vlgmr.msra.gmra.mxu0 %vm198_vm2, %v1563_v31 }
0x21b4   :  { %1978 = vmatpush1.msk.msra.mxu0 %vm65_vm0, %v2679_v43  ;;  %1727 = vmatprep.mubr.f32.mxu0 %v2279_v0 }
0x21b5   :  { %1685 = vmatprep.subr.mxu0 %v2684_v44  ;;  %v1520_v44 = vmul.f32 %v2197_v39, %v2716_v8 }
0x21b6   :  { %1686 = vmatpush1.msra.mxu0 %v2687_v45  ;;  %v1528_v0 = vpop.permute.xlu0 %1527  ;;  %v2231_v45 = vld [vmem:[%s2816_s4] ss:$0 sm:$0xff] }
0x21b7   :  { %1687 = vmatprep.subr.mxu0 %v2690_v37 }
0x21b8   :  { %1688 = vmatpush1.msra.mxu0 %v2693_v46 }
0x21b9   :  { %1689 = vmatprep.subr.mxu0 %v2696_v48  ;;  %v1530_v48 = vadd.f32 %v1528_v0, %v1520_v44 }
0x21ba   :  { %1690 = vmatpush1.msra.mxu0 %v2699_v50 }
0x21bb   :  { %1691 = vmatprep.subr.mxu0 %v2702_v51  ;;  %2198 = vtanh.f32 %v1530_v48 }
0x21bc   :  { %1692 = vmatpush1.msra.mxu0 %v2705_v53 }
0x21bd   :  { %1693 = vmatprep.subr.mxu0 %v2708_v54 }
0x21be   :  { %1694 = vmatpush1.msra.mxu0 %v2711_v55 }
0x21c8   :  { %v2199_v51 = vpop.eup %2198 }
0x2273   :  { %v1632_v43 = vpop.f32.mrf.mxu0 }
0x2274   :  { %v1633_v37 = vadd.f32 %v2231_v45, %v1632_v43 }
0x2275   :  { %v2039_v46 = vpop.f32.mrf.mxu0 }
0x2276   :  { %v1636_v50 = vsel %vm271_vm3, %v1633_v37, -inf }
0x2277   :  { %1637 = vmax.xlane.f32.xlu1 %v1636_v50 }
0x2288   :  { %1533 = vrot.lane.b32.xlu1 %v2199_v51, %s2282_s13 }
0x2300   :  { %v1638_v53 = vpop.xlane.xlu1 %1637 }
0x2301   :  { %v1639_v54 = vsub.f32 %v1633_v37, %v1638_v53 }
0x2303   :  { %v1640_v55 = vmul.f32 1.442695, %v1639_v54 }
0x2304   :  { %v1534_v3 = vpop.permute.xlu1 %1533 }
0x2305   :  { %2200 = vpow2.f32 %v1640_v55  ;;  %v1536_v4 = vmul.f32 %v2197_v39, %v1534_v3 }
0x2307   :  { %v1768_v5 = vrot.slane %v1536_v4, 4 }
0x2309   :  { %v1779_v8 = vsel %vm65_vm0, %v1778_v6, %v1768_v5 }
0x2312   :  { %v2201_v9 = vpop.eup %2200 }
0x2313   :  { %v1642_v10 = vsel %vm271_vm3, %v2201_v9, 0.0 }
0x2314   :  { %1643 = vadd.xlane.f32.xlu0 %v1642_v10 }
0x232a   :  { %1648 = vrot.lane.b32.xlu0 %v1536_v4, %s2283_s16 }
0x239d   :  { %v1644_v11 = vpop.xlane.xlu0 %1643 }
0x239e   :  { %2202 = vrcp.f32 %v1644_v11 }
0x23a1   :  { %v1649_v7 = vpop.permute.xlu0 %1648 }
0x23ab   :  { %v2203_v12 = vpop.eup %2202 }
0x23ac   :  { %v1646_v47 = vmul.f32 %v2203_v12, %v2201_v9 }
0x23ae   :  { %1652 = vrot.lane.b32.xlu1 %v1646_v47, %s2283_s16 }
0x23b2   :  { %1655 = vrot.lane.b32.xlu1 %v1560_v38, %s2286_s19 }
0x2420   :  { %v1653_v57 = vpop.permute.xlu1 %1652 }
0x2421   :  { %v1658_v60 = vsel %vm294_vm4, %v1649_v7, %v1653_v57 }
0x2424   :  { %v1656_v41 = vpop.permute.xlu1 %1655 }
0x2425   :  { %v1659_v59 = vsel %vm296_vm5, %v1658_v60, %v1656_v41 }
0x2426   :  { %1979 = vmatmul.mubr.msk.f32.vlgmr.msra.gmra.mxu0 %vm61_vm6, %v1659_v59 }
0x24e6   :  { %v1729_v61 = vpop.f32.mrf.mxu0 }
0x24e7   :  { %v1735_v62 = vadd.f32 %v1980_v49, %v1729_v61 }
0x24e8   :  { %v1731_v13 = vpop.f32.mrf.mxu0 }
0x24e9   :  { %2204 = vtanh.f32 %v1735_v62  ;;  %v1981_v15 = vmul.f32 -1.442695, %v1735_v62 }
0x24eb   :  { %2206 = vpow2.f32 %v1981_v15 }
0x24f6   :  { %v2205_v14 = vpop.eup %2204 }
0x24f7   :  { %1745 = vrot.lane.b32.xlu0 %v2205_v14, %s2282_s13 }
0x24f8   :  { %v2207_v52 = vpop.eup %2206 }
0x24f9   :  { %v1739_v16 = vadd.f32 1.0, %v2207_v52 }
0x24fb   :  { %2208 = vrcp.f32 %v1739_v16 }
0x2508   :  { %v2209_v17 = vpop.eup %2208 }
0x2509   :  { %v1743_v19 = vmul.f32 %v2209_v17, %v1530_v48 }
0x2569   :  { %v1746_v18 = vpop.permute.xlu0 %1745 }
0x256a   :  { %v1748_v56 = vmul.f32 %v2209_v17, %v1746_v18 }
0x256c   :  { %1750 = vrot.lane.b32.xlu1 %v1748_v56, %s2283_s16 }
0x2570   :  { %1794 = vrot.lane.b32.xlu1 %v2595_v58, %s2283_s16  ;;  %v1782_v58 = vld [vmem:[%s2817_s5 + $0x8] sm:$0xff]  ;;  %s2287_s5 = smov [#allocation5]  }
0x2571   :  { %2044 = vmatprep.subr.mxu1 %v1782_v58  ;;  %s1911_s6 = sshll.u32 %s2287_s5, 4  ;;  %s1912_s6 = int_to_ptr.vmem [resolvable:$true] %s1911_s6 }
0x2572   :  { %2045 = vmatpush3.msra.mxu1 %v1782_v58  ;;  %p2257_p6 = scmp.lt.s32.totalorder %s1912_s6, %s1912_s6 }
0x2573   :  { %2046 = vmatprep.subr.mxu1 %v1781_v23 }
0x2574   :  { %2047 = vmatpush3.msra.mxu1 %v1781_v23 }
0x25de   :  { %v1751_v20 = vpop.permute.xlu1 %1750 }
0x25df   :  { %v1753_v21 = vadd.f32 %v1751_v20, %v1743_v19 }
0x25e1   :  { %2210 = vtanh.f32 %v1753_v21 }
0x25e2   :  { %v1795_v36 = vpop.permute.xlu1 %1794 }
0x25e3   :  { %2048 = vmatprep.mubr.msk.f32.mxu1 %vm294_vm4, %v1795_v36 }
0x25ee   :  { %v2211_v24 = vpop.eup %2210 }
0x25ef   :  { %1756 = vrot.lane.b32.xlu0 %v2211_v24, %s2282_s13  ;;  %s2252_s13 = scalar_lea.vmem %s1912_s6, 256 }
0x25f0   :  { %p2253_p5 = scmp.ne.s32.totalorder %s1912_s6, %s2252_s13  ;;  %p2258_p7 = scmp.lt.s32.totalorder %s2252_s13, %s2252_s13 }
0x25f2   :  { %p2259_p8 = por %p2258_p7, %p2257_p6 }
0x25f4   :  { %p2260_p9 = pnand %p2259_p8, %p2253_p5 }
0x2661   :  { %v1757_v1 = vpop.permute.xlu0 %1756 }
0x2662   :  { %v1759_v25 = vmul.f32 %v2209_v17, %v1757_v1 }
0x2664   :  { %v1771_v26 = vrot.slane %v1759_v25, 2 }
0x2666   :  { %v1780_v29 = vsel %vm1776_vm8, %v1779_v8, %v1771_v26 }
0x2667   :  { %1796 = vrot.lane.b32.xlu0 %v1780_v29, %s2283_s16 }
0x26d9   :  { %v1797_v30 = vpop.permute.xlu0 %1796 }
0x26da   :  { %2049 = vmatmul.mubr.msk.f32.vlgmr.msra.gmra.mxu1 %vm294_vm4, %v1797_v30 }
0x279a   :  { %v2050_v32 = vpop.f32.mrf.mxu1 }
0x279b   :  { %v1874_v34 = vadd.f32 %v2050_v32, %v1982_v33 }
0x279c   :  { %v1868_v35 = vpop.f32.mrf.mxu1 }
0x279d   :  { %v1869_v28 = vadd.f32 %v1982_v33, %v1868_v35  ;;  %v1881_v27 = vsel %vm1877_vm9, %v1874_v34, -inf }
0x279e   :  { %1882 = vmax.xlane.f32.xlu0 %v1881_v27 }
0x279f   :  { %v1878_v38 = vsel %vm1877_vm9, %v1869_v28, -inf }
0x27a0   :  { %1879 = vmax.xlane.f32.xlu1 %v1878_v38 }
0x2827   :  { %v1883_v39 = vpop.xlane.xlu0 %1882 }
0x2828   :  { %v1885_v40 = vsub.f32 %v1874_v34, %v1883_v39 }
0x2829   :  { %v1880_v42 = vpop.xlane.xlu1 %1879 }
0x282a   :  { %v1888_v31 = vmul.f32 1.442695, %v1885_v40  ;;  %v1884_v0 = vsub.f32 %v1869_v28, %v1880_v42 }
0x282c   :  { %2212 = vpow2.f32 %v1888_v31  ;;  %v1886_v43 = vmul.f32 1.442695, %v1884_v0 }
0x282e   :  { %2214 = vpow2.f32 %v1886_v43 }
0x2839   :  { %v2213_v44 = vpop.eup %2212 }
0x283a   :  { %v1893_v45 = vsel %vm1877_vm9, %v2213_v44, 0.0 }
0x283b   :  { %v2215_v37 = vpop.eup %2214  ;;  %1894 = vadd.xlane.f32.xlu1 %v1893_v45 }
0x283c   :  { %v1890_v46 = vsel %vm1877_vm9, %v2215_v37, 0.0 }
0x283d   :  { %1891 = vadd.xlane.f32.xlu0 %v1890_v46 }
0x28c4   :  { %v1895_v48 = vpop.xlane.xlu1 %1894 }
0x28c5   :  { %2216 = vlog2.f32 %v1895_v48 }
0x28c6   :  { %v1892_v50 = vpop.xlane.xlu0 %1891 }
0x28c7   :  { %2218 = vlog2.f32 %v1892_v50 }
0x28d2   :  { %v2217_v51 = vpop.eup %2216 }
0x28d3   :  { %v1899_v53 = vmul.f32 0.6931472, %v2217_v51 }
0x28d4   :  { %v2219_v54 = vpop.eup %2218 }
0x28d5   :  { %v1901_v55 = vadd.f32 %v1899_v53, %v1883_v39  ;;  %v1897_v2 = vmul.f32 0.6931472, %v2219_v54 }
0x28d7   :  { %v1903_v3 = vsub.f32 %v1874_v34, %v1901_v55  ;;  %v1900_v4 = vadd.f32 %v1897_v2, %v1880_v42 }
0x28d9   :  { %1905 = vst.msk [vmem:[#allocation5 + $0x8] sm:$0xff] %vm1877_vm9, %v1903_v3  ;;  %v1902_v5 = vsub.f32 %v1869_v28, %v1900_v4 }
0x28db   :  { %1904 = vst.msk [vmem:[#allocation5] sm:$0xff] %vm1877_vm9, %v1902_v5 }
0x28dc   :  { %2263 = shalt.err (!%p2260_p9)
}
0x28dd   :  { %s2288_s16 = smov 128  }
0x28de   :  { %1917 = dma.vmem_to_hbm [thread:$0]  %s1912_s6, 256, %s2819_s7, [#allocation4], %s2288_s16, %s2288_s16, %s2281_s12  }
0x28df   :  { %2274 = dma.done.wait [#allocation4], 256  }
0x28e0   :  { %2275 = vsyncadd [#allocation4], 4294967040 }
0x28e1   :  { %1921 = vsyncpa [#allocation3], 1 }
0x28e2   :  { %1922 = vsyncpa [#allocation4], 1 }

</bundles_post_ra>
